<compile_context>
chip_gen: v7x
topology: tpu7x:2x2x1
jax: 0.10.0
libtpu: 0.0.40
codegen_flags: <defaults>
</compile_context>

<pallas_src>
import jax
import jax.numpy as jnp
from jax.experimental import pallas as pl
from jax.experimental.pallas import tpu as pltpu


# ----------------------------------------------------------------------------- #
# Fused kernel: conditional bi-LSTM encoder + attention + classifier + CE loss
# ----------------------------------------------------------------------------- #
def _cond_enc_kernel(xc_ref, xr_ref,
                     wih_c_ref, bih_c_ref, whh_c_ref,
                     wih_r_ref, bih_r_ref, whh_r_ref,
                     waT_ref, ba_ref, wcT_ref, bc_ref, wlT_ref, bl_ref,
                     mt_ref, mtT_ref, y_ref,
                     logits_ref, loss_ref,
                     xwc_scr, xwr_scr):
    TB, _ = xc_ref.shape                  # T * B
    H4 = whh_c_ref.shape[1]               # 4H
    H = H4 // 4
    B, L = logits_ref.shape
    B2 = 2 * B
    T = TB // B

    # Direction-block mask (B2, 2H): 1 where (row < B) == (lane < H).
    # Rows 0:B are the forward direction, rows B:2B the backward direction.
    row = jax.lax.broadcasted_iota(jnp.int32, (B2, 2 * H), 0)
    lane = jax.lax.broadcasted_iota(jnp.int32, (B2, 2 * H), 1)
    dirmask = ((row < B) == (lane < H)).astype(jnp.float32)

    def bilstm(x_ref, wih_ref, bih_ref, whh_ref, xw_scr, c_init, collect):
        # Hoisted input projection for every timestep and both directions in
        # one MXU pass: lanes [0:4H] = fwd gates, [4H:8H] = bwd gates.
        # The store is lane-dense (8H lanes).
        xw_scr[...] = (jnp.dot(x_ref[...], wih_ref[...],
                               preferred_element_type=jnp.float32)
                       + bih_ref[...])                       # (T*B, 8H)

        whh = whh_ref[...]                                   # (2H, 4H) = [Whh_f^T; Whh_b^T]
        h = jnp.zeros((B2, H), jnp.float32)                  # register-resident state
        c = c_init                                           # (B2, H)
        hs = []

        for s in range(T):                                   # T is small: static unroll
            # fwd rows consume time s, bwd rows consume time T-1-s
            xw_f = xw_scr[s * B:(s + 1) * B, 0:H4]
            xw_b = xw_scr[(T - 1 - s) * B:(T - s) * B, H4:2 * H4]
            gates = jnp.concatenate([xw_f, xw_b], axis=0)    # (B2, 4H)

            if s > 0:    # h_0 == 0: skip the recurrent matmul on the first step
                # direction-blocked h: rows 0:B -> lanes [0:H], rows B:2B -> [H:2H]
                hb = jnp.concatenate([h, h], axis=-1) * dirmask          # (B2, 2H)
                gates = gates + jnp.dot(hb, whh,
                                        preferred_element_type=jnp.float32)

            # whole-vreg nonlinearities, static lane slices (gate order i,f,g,o)
            sig = jax.nn.sigmoid(gates)
            th = jnp.tanh(gates)
            i_g = sig[:, 0:H]
            f_g = sig[:, H:2 * H]
            g_g = th[:, 2 * H:3 * H]
            o_g = sig[:, 3 * H:4 * H]

            c = f_g * c + i_g * g_g
            if collect or s < T - 1:                         # last h of LSTM_c is unused
                h = o_g * jnp.tanh(c)
            if collect:
                hs.append(h)                                 # value, no VMEM store
        return c, hs

    # LSTM_c (attn=False path): only its final cell state is consumed.
    cn_c, _ = bilstm(xc_ref, wih_c_ref, bih_c_ref, whh_c_ref, xwc_scr,
                     jnp.zeros((B2, H), jnp.float32), collect=False)
    # LSTM_r: c_0 = cn_c, h_0 = 0; collects hidden states for attention.
    _, hs = bilstm(xr_ref, wih_r_ref, bih_r_ref, whh_r_ref, xwr_scr,
                   cn_c, collect=True)

    # Bidirectional recombination ONCE, post-loop, on register values:
    # lo[t*B + b] = [h_fwd(t, b) | h_bwd(t, b)]; h_bwd(t) was produced at step T-1-t.
    lo = jnp.concatenate(
        [jnp.concatenate([hs[t][0:B, :], hs[T - 1 - t][B:B2, :]], axis=-1)
         for t in range(T)], axis=0)                          # (T*B, 2H)

    # Attention head (batch-vectorized over all (t, b) rows).
    attn = jnp.tanh(jnp.dot(lo, waT_ref[...],
                            preferred_element_type=jnp.float32) + ba_ref[...])
    sc = (jnp.dot(attn, wcT_ref[...], preferred_element_type=jnp.float32)
          + bc_ref[...])                                       # (T*B, 1)

    # Numerically safe per-batch max for the time softmax (mtT one-hot membership).
    mtT = mtT_ref[...]                                         # (T*B, B)
    smask = jnp.where(mtT > 0.0, sc, -jnp.inf)                 # (T*B, B)
    mx_b = jnp.max(smask, axis=0, keepdims=True)               # (1, B)
    mx_row = jnp.sum(mtT * mx_b, axis=1, keepdims=True)        # (T*B, 1)
    e = jnp.exp(sc - mx_row)                                   # (T*B, 1)

    # Fused reductions: a single matmul gives both the weighted sum and denominator.
    z = jnp.concatenate([lo * e, e], axis=-1)                  # (T*B, 2H+1)
    red = jnp.dot(mt_ref[...], z, preferred_element_type=jnp.float32)  # (B, 2H+1)
    a = red[:, 0:2 * H] / red[:, 2 * H:2 * H + 1]              # (B, 2H)

    # Classifier: single lane-contiguous store of all logits.
    logits = jnp.dot(a, wlT_ref[...],
                     preferred_element_type=jnp.float32) + bl_ref[...]  # (B, L)
    logits_ref[...] = logits

    # Mean cross entropy.
    mx = jnp.max(logits, axis=1, keepdims=True)
    lse = mx + jnp.log(jnp.sum(jnp.exp(logits - mx), axis=1, keepdims=True))
    cls = jax.lax.broadcasted_iota(jnp.int32, (B, L), 1)
    true_logit = jnp.sum(jnp.where(cls == y_ref[...], logits, 0.0),
                         axis=1, keepdims=True)                 # (B, 1)
    loss_ref[...] = jnp.sum(lse - true_logit, axis=0, keepdims=True) / B


# ----------------------------------------------------------------------------- #
# Host-side layout plumbing (no compute): stack per-direction weights/bias,
# flatten the time/batch dims, build the batch-membership matrices.
# ----------------------------------------------------------------------------- #
def _fold_weights(p):
    """wih: [Wih_f^T | Wih_b^T] -> (E, 8H);  bih: [b_f | b_b] -> (1, 8H);
    whh: [Whh_f^T ; Whh_b^T] -> (2H, 4H)."""
    wih = jnp.concatenate([p["wihT"][0], p["wihT"][1]], axis=1)
    bih = jnp.concatenate([p["b"][0], p["b"][1]], axis=1)
    whh = jnp.concatenate([p["whhT"][0], p["whhT"][1]], axis=0)
    return wih, bih, whh


def conditional_encoding_forward(params, x_c, x_r, y_true):
    T, B, E = x_c.shape
    H = params["c"]["whhT"].shape[1]
    L = params["wlT"].shape[1]

    wih_c, bih_c, whh_c = _fold_weights(params["c"])
    wih_r, bih_r, whh_r = _fold_weights(params["r"])

    xc2 = x_c.reshape(T * B, E)
    xr2 = x_r.reshape(T * B, E)

    # membership matrices: mtT[t*B + b', b] = 1 iff b' == b ;  mt = mtT^T
    mtT = jnp.tile(jnp.eye(B, dtype=jnp.float32), (T, 1))      # (T*B, B)
    mt = mtT.T                                                  # (B, T*B)
    y2d = y_true.astype(jnp.int32).reshape(B, 1)

    vmem = pl.BlockSpec(memory_space=pltpu.MemorySpace.VMEM)
    logits, loss2d = pl.pallas_call(
        _cond_enc_kernel,
        out_shape=(jax.ShapeDtypeStruct((B, L), jnp.float32),
                   jax.ShapeDtypeStruct((1, 1), jnp.float32)),
        in_specs=[vmem] * 17,
        out_specs=(vmem, vmem),
        scratch_shapes=[pltpu.VMEM((T * B, 8 * H), jnp.float32),   # xw (LSTM_c)
                        pltpu.VMEM((T * B, 8 * H), jnp.float32)],  # xw (LSTM_r)
    )(xc2, xr2, wih_c, bih_c, whh_c, wih_r, bih_r, whh_r,
      params["waT"], params["ba"], params["wcT"], params["bc"],
      params["wlT"], params["bl"], mt, mtT, y2d)
    return loss2d[0, 0], logits


# ----------------------------------------------------------------------------- #
# Pure-JAX reference (correctness check)
# ----------------------------------------------------------------------------- #
def _bilstm_ref(x, wihT, whhT, b, c0):
    def run(d, reverse):
        xs = x[::-1] if reverse else x

        def step(carry, xt):
            h, c = carry
            gates = xt @ wihT[d] + h @ whhT[d] + b[d, 0]
            i, f, g, o = jnp.split(gates, 4, axis=-1)
            c = jax.nn.sigmoid(f) * c + jax.nn.sigmoid(i) * jnp.tanh(g)
            h = jax.nn.sigmoid(o) * jnp.tanh(c)
            return (h, c), h

        (h, c), hs = jax.lax.scan(step, (jnp.zeros_like(c0[d]), c0[d]), xs)
        if reverse:
            hs = hs[::-1]
        return hs, h, c

    hs_f, hf_f, cf_f = run(0, False)
    hs_b, hf_b, cf_b = run(1, True)
    return (jnp.stack([hs_f, hs_b]), jnp.stack([hf_f, hf_b]),
            jnp.stack([cf_f, cf_b]))


def reference_forward(params, x_c, x_r, y_true):
    B = x_c.shape[1]
    H = params["c"]["whhT"].shape[1]
    c0 = jnp.zeros((2, B, H), jnp.float32)
    _, _, cn_c = _bilstm_ref(x_c, params["c"]["wihT"], params["c"]["whhT"],
                             params["c"]["b"], c0)
    hout_r, _, _ = _bilstm_ref(x_r, params["r"]["wihT"], params["r"]["whhT"],
                               params["r"]["b"], cn_c)
    lstm_out = jnp.concatenate([hout_r[0], hout_r[1]], axis=-1)   # (T, B, 2H)
    attn = jnp.tanh(lstm_out @ params["waT"] + params["ba"])
    sc = attn @ params["wcT"] + params["bc"]
    w = jax.nn.softmax(sc, axis=0)
    a = jnp.sum(lstm_out * w, axis=0)                             # (B, 2H)
    logits = a @ params["wlT"] + params["bl"]
    lse = jax.scipy.special.logsumexp(logits, axis=1)
    tl = jnp.take_along_axis(logits, y_true[:, None], axis=1)[:, 0]
    loss = jnp.mean(lse - tl)
    return loss, logits


# ----------------------------------------------------------------------------- #
if __name__ == "__main__":
    T, B, E, H, L = 8, 2, 32, 16, 2   # seq, batch, embedding_dim, hidden_dim, labels

    key = jax.random.PRNGKey(0)
    keys = jax.random.split(key, 16)

    def nrm(k, shape, scale=0.1):
        return scale * jax.random.normal(k, shape, dtype=jnp.float32)

    params = {
        "c": {"wihT": nrm(keys[0], (2, E, 4 * H)),
              "whhT": nrm(keys[1], (2, H, 4 * H)),
              "b":    nrm(keys[2], (2, 1, 4 * H))},   # b_ih + b_hh combined
        "r": {"wihT": nrm(keys[3], (2, E, 4 * H)),
              "whhT": nrm(keys[4], (2, H, 4 * H)),
              "b":    nrm(keys[5], (2, 1, 4 * H))},
        "waT": nrm(keys[6], (2 * H, H)),   "ba": nrm(keys[7], (1, H)),
        "wcT": nrm(keys[8], (H, 1)),       "bc": nrm(keys[9], (1, 1)),
        "wlT": nrm(keys[10], (2 * H, L)),  "bl": nrm(keys[11], (1, L)),
    }

    x_c = jax.random.normal(keys[12], (T, B, E), dtype=jnp.float32)
    x_r = jax.random.normal(keys[13], (T, B, E), dtype=jnp.float32)
    y_true = jax.random.randint(keys[14], (B,), 0, L, dtype=jnp.int32)

    loss, logits = conditional_encoding_forward(params, x_c, x_r, y_true)
    jax.block_until_ready((loss, logits))

    loss_r, logits_r = reference_forward(params, x_c, x_r, y_true)
    assert jnp.allclose(logits, logits_r, rtol=1e-4, atol=1e-4), (logits, logits_r)
    assert jnp.allclose(loss, loss_r, rtol=1e-4, atol=1e-4), (loss, loss_r)

    print("KERNEL_OK")
</pallas_src>

<mosaic_0001>
module attributes {stable_mosaic.version = 11 : i64} {
  func.func @_cond_enc_kernel(%arg0: memref<16x32xf32, #tpu.memory_space<vmem>>, %arg1: memref<16x32xf32, #tpu.memory_space<vmem>>, %arg2: memref<32x128xf32, #tpu.memory_space<vmem>>, %arg3: memref<1x128xf32, #tpu.memory_space<vmem>>, %arg4: memref<32x64xf32, #tpu.memory_space<vmem>>, %arg5: memref<32x128xf32, #tpu.memory_space<vmem>>, %arg6: memref<1x128xf32, #tpu.memory_space<vmem>>, %arg7: memref<32x64xf32, #tpu.memory_space<vmem>>, %arg8: memref<32x16xf32, #tpu.memory_space<vmem>>, %arg9: memref<1x16xf32, #tpu.memory_space<vmem>>, %arg10: memref<16x1xf32, #tpu.memory_space<vmem>>, %arg11: memref<1x1xf32, #tpu.memory_space<vmem>>, %arg12: memref<32x2xf32, #tpu.memory_space<vmem>>, %arg13: memref<1x2xf32, #tpu.memory_space<vmem>>, %arg14: memref<2x16xf32, #tpu.memory_space<vmem>>, %arg15: memref<16x2xf32, #tpu.memory_space<vmem>>, %arg16: memref<2x1xi32, #tpu.memory_space<vmem>>, %arg17: memref<2x2xf32, #tpu.memory_space<vmem>>, %arg18: memref<1x1xf32, #tpu.memory_space<vmem>>, %arg19: memref<16x128xf32, #tpu.memory_space<vmem>>, %arg20: memref<16x128xf32, #tpu.memory_space<vmem>>) attributes {dimension_semantics = [], scalar_prefetch = 0 : i64, scratch_operands = 2 : i64, tpu.core_type = #tpu.core_type<tc>} {
    %0 = tpu.iota {dimensions = array<i32: 0>} : vector<4x32xi32>
    %1 = tpu.iota {dimensions = array<i32: 1>} : vector<4x32xi32>
    %c2_i32 = arith.constant 2 : i32
    %2 = vector.broadcast %c2_i32 : i32 to vector<4x32xi32>
    %3 = arith.cmpi slt, %0, %2 : vector<4x32xi32>
    %c16_i32 = arith.constant 16 : i32
    %4 = vector.broadcast %c16_i32 : i32 to vector<4x32xi32>
    %5 = arith.cmpi slt, %1, %4 : vector<4x32xi32>
    %6 = arith.xori %3, %5 : vector<4x32xi1>
    %cst = arith.constant dense<true> : vector<4x32xi1>
    %7 = arith.xori %6, %cst : vector<4x32xi1>
    %8 = arith.extui %7 : vector<4x32xi1> to vector<4x32xi32>
    %9 = arith.sitofp %8 : vector<4x32xi32> to vector<4x32xf32>
    %cst_0 = arith.constant 0.000000e+00 : f32
    %10 = vector.broadcast %cst_0 : f32 to vector<4x16xf32>
    %c0 = arith.constant 0 : index
    %c0_1 = arith.constant 0 : index
    %11 = vector.load %arg0[%c0, %c0_1] : memref<16x32xf32, #tpu.memory_space<vmem>>, vector<16x32xf32>
    %c0_2 = arith.constant 0 : index
    %c0_3 = arith.constant 0 : index
    %12 = vector.load %arg2[%c0_2, %c0_3] : memref<32x128xf32, #tpu.memory_space<vmem>>, vector<32x128xf32>
    %cst_4 = arith.constant dense<0.000000e+00> : vector<16x128xf32>
    %13 = tpu.matmul %11, %12, %cst_4 {dimension_numbers = #tpu.dot_dimension_numbers<[1], [0], [0], [1], [0, 0, 1, 1], [], []>} : vector<16x32xf32>, vector<32x128xf32>, vector<16x128xf32> -> vector<16x128xf32>
    %c0_5 = arith.constant 0 : index
    %c0_6 = arith.constant 0 : index
    %14 = vector.load %arg3[%c0_5, %c0_6] : memref<1x128xf32, #tpu.memory_space<vmem>>, vector<1x128xf32>
    %15 = vector.broadcast %14 : vector<1x128xf32> to vector<16x128xf32>
    %16 = arith.addf %13, %15 : vector<16x128xf32>
    %c0_7 = arith.constant 0 : index
    %c0_8 = arith.constant 0 : index
    %17 = vector.load %arg19[%c0_7, %c0_8] : memref<16x128xf32, #tpu.memory_space<vmem>>, vector<16x128xf32>
    tpu.vector_store %arg19[%c0_7, %c0_8], %16 {strides = array<i32>} : memref<16x128xf32, #tpu.memory_space<vmem>>, vector<16x128xf32>,
    %c0_9 = arith.constant 0 : index
    %c0_10 = arith.constant 0 : index
    %18 = vector.load %arg4[%c0_9, %c0_10] : memref<32x64xf32, #tpu.memory_space<vmem>>, vector<32x64xf32>
    %c0_11 = arith.constant 0 : index
    %c0_12 = arith.constant 0 : index
    %19 = vector.load %arg19[%c0_11, %c0_12] : memref<16x128xf32, #tpu.memory_space<vmem>>, vector<2x64xf32>
    %c14 = arith.constant 14 : index
    %c64 = arith.constant 64 : index
    %20 = vector.load %arg19[%c14, %c64] : memref<16x128xf32, #tpu.memory_space<vmem>>, vector<2x64xf32>
    %21 = tpu.concatenate %19, %20 in 0 : vector<2x64xf32>, vector<2x64xf32> -> vector<4x64xf32>
    %22 = arith.negf %21 : vector<4x64xf32>
    %23 = math.exp %22 : vector<4x64xf32>
    %cst_13 = arith.constant 1.000000e+00 : f32
    %24 = vector.broadcast %cst_13 : f32 to vector<4x64xf32>
    %25 = arith.addf %24, %23 : vector<4x64xf32>
    %26 = arith.divf %24, %25 : vector<4x64xf32>
    %27 = math.tanh %21 : vector<4x64xf32>
    %28 = vector.extract_strided_slice %26 {offsets = [0, 0], sizes = [4, 16], strides = [1, 1]} : vector<4x64xf32> to vector<4x16xf32>
    %29 = vector.extract_strided_slice %26 {offsets = [0, 16], sizes = [4, 16], strides = [1, 1]} : vector<4x64xf32> to vector<4x16xf32>
    %30 = vector.extract_strided_slice %27 {offsets = [0, 32], sizes = [4, 16], strides = [1, 1]} : vector<4x64xf32> to vector<4x16xf32>
    %31 = vector.extract_strided_slice %26 {offsets = [0, 48], sizes = [4, 16], strides = [1, 1]} : vector<4x64xf32> to vector<4x16xf32>
    %32 = arith.mulf %29, %10 : vector<4x16xf32>
    %33 = arith.mulf %28, %30 : vector<4x16xf32>
    %34 = arith.addf %32, %33 : vector<4x16xf32>
    %35 = math.tanh %34 : vector<4x16xf32>
    %36 = arith.mulf %31, %35 : vector<4x16xf32>
    %c2 = arith.constant 2 : index
    %c0_14 = arith.constant 0 : index
    %37 = vector.load %arg19[%c2, %c0_14] : memref<16x128xf32, #tpu.memory_space<vmem>>, vector<2x64xf32>
    %c12 = arith.constant 12 : index
    %c64_15 = arith.constant 64 : index
    %38 = vector.load %arg19[%c12, %c64_15] : memref<16x128xf32, #tpu.memory_space<vmem>>, vector<2x64xf32>
    %39 = tpu.concatenate %37, %38 in 0 : vector<2x64xf32>, vector<2x64xf32> -> vector<4x64xf32>
    %40 = tpu.concatenate %36, %36 in 1 : vector<4x16xf32>, vector<4x16xf32> -> vector<4x32xf32>
    %41 = arith.mulf %40, %9 : vector<4x32xf32>
    %cst_16 = arith.constant dense<0.000000e+00> : vector<4x64xf32>
    %42 = tpu.matmul %41, %18, %cst_16 {dimension_numbers = #tpu.dot_dimension_numbers<[1], [0], [0], [1], [0, 0, 1, 1], [], []>} : vector<4x32xf32>, vector<32x64xf32>, vector<4x64xf32> -> vector<4x64xf32>
    %43 = arith.addf %39, %42 : vector<4x64xf32>
    %44 = arith.negf %43 : vector<4x64xf32>
    %45 = math.exp %44 : vector<4x64xf32>
    %cst_17 = arith.constant 1.000000e+00 : f32
    %46 = vector.broadcast %cst_17 : f32 to vector<4x64xf32>
    %47 = arith.addf %46, %45 : vector<4x64xf32>
    %48 = arith.divf %46, %47 : vector<4x64xf32>
    %49 = math.tanh %43 : vector<4x64xf32>
    %50 = vector.extract_strided_slice %48 {offsets = [0, 0], sizes = [4, 16], strides = [1, 1]} : vector<4x64xf32> to vector<4x16xf32>
    %51 = vector.extract_strided_slice %48 {offsets = [0, 16], sizes = [4, 16], strides = [1, 1]} : vector<4x64xf32> to vector<4x16xf32>
    %52 = vector.extract_strided_slice %49 {offsets = [0, 32], sizes = [4, 16], strides = [1, 1]} : vector<4x64xf32> to vector<4x16xf32>
    %53 = vector.extract_strided_slice %48 {offsets = [0, 48], sizes = [4, 16], strides = [1, 1]} : vector<4x64xf32> to vector<4x16xf32>
    %54 = arith.mulf %51, %34 : vector<4x16xf32>
    %55 = arith.mulf %50, %52 : vector<4x16xf32>
    %56 = arith.addf %54, %55 : vector<4x16xf32>
    %57 = math.tanh %56 : vector<4x16xf32>
    %58 = arith.mulf %53, %57 : vector<4x16xf32>
    %c4 = arith.constant 4 : index
    %c0_18 = arith.constant 0 : index
    %59 = vector.load %arg19[%c4, %c0_18] : memref<16x128xf32, #tpu.memory_space<vmem>>, vector<2x64xf32>
    %c10 = arith.constant 10 : index
    %c64_19 = arith.constant 64 : index
    %60 = vector.load %arg19[%c10, %c64_19] : memref<16x128xf32, #tpu.memory_space<vmem>>, vector<2x64xf32>
    %61 = tpu.concatenate %59, %60 in 0 : vector<2x64xf32>, vector<2x64xf32> -> vector<4x64xf32>
    %62 = tpu.concatenate %58, %58 in 1 : vector<4x16xf32>, vector<4x16xf32> -> vector<4x32xf32>
    %63 = arith.mulf %62, %9 : vector<4x32xf32>
    %cst_20 = arith.constant dense<0.000000e+00> : vector<4x64xf32>
    %64 = tpu.matmul %63, %18, %cst_20 {dimension_numbers = #tpu.dot_dimension_numbers<[1], [0], [0], [1], [0, 0, 1, 1], [], []>} : vector<4x32xf32>, vector<32x64xf32>, vector<4x64xf32> -> vector<4x64xf32>
    %65 = arith.addf %61, %64 : vector<4x64xf32>
    %66 = arith.negf %65 : vector<4x64xf32>
    %67 = math.exp %66 : vector<4x64xf32>
    %cst_21 = arith.constant 1.000000e+00 : f32
    %68 = vector.broadcast %cst_21 : f32 to vector<4x64xf32>
    %69 = arith.addf %68, %67 : vector<4x64xf32>
    %70 = arith.divf %68, %69 : vector<4x64xf32>
    %71 = math.tanh %65 : vector<4x64xf32>
    %72 = vector.extract_strided_slice %70 {offsets = [0, 0], sizes = [4, 16], strides = [1, 1]} : vector<4x64xf32> to vector<4x16xf32>
    %73 = vector.extract_strided_slice %70 {offsets = [0, 16], sizes = [4, 16], strides = [1, 1]} : vector<4x64xf32> to vector<4x16xf32>
    %74 = vector.extract_strided_slice %71 {offsets = [0, 32], sizes = [4, 16], strides = [1, 1]} : vector<4x64xf32> to vector<4x16xf32>
    %75 = vector.extract_strided_slice %70 {offsets = [0, 48], sizes = [4, 16], strides = [1, 1]} : vector<4x64xf32> to vector<4x16xf32>
    %76 = arith.mulf %73, %56 : vector<4x16xf32>
    %77 = arith.mulf %72, %74 : vector<4x16xf32>
    %78 = arith.addf %76, %77 : vector<4x16xf32>
    %79 = math.tanh %78 : vector<4x16xf32>
    %80 = arith.mulf %75, %79 : vector<4x16xf32>
    %c6 = arith.constant 6 : index
    %c0_22 = arith.constant 0 : index
    %81 = vector.load %arg19[%c6, %c0_22] : memref<16x128xf32, #tpu.memory_space<vmem>>, vector<2x64xf32>
    %c8 = arith.constant 8 : index
    %c64_23 = arith.constant 64 : index
    %82 = vector.load %arg19[%c8, %c64_23] : memref<16x128xf32, #tpu.memory_space<vmem>>, vector<2x64xf32>
    %83 = tpu.concatenate %81, %82 in 0 : vector<2x64xf32>, vector<2x64xf32> -> vector<4x64xf32>
    %84 = tpu.concatenate %80, %80 in 1 : vector<4x16xf32>, vector<4x16xf32> -> vector<4x32xf32>
    %85 = arith.mulf %84, %9 : vector<4x32xf32>
    %cst_24 = arith.constant dense<0.000000e+00> : vector<4x64xf32>
    %86 = tpu.matmul %85, %18, %cst_24 {dimension_numbers = #tpu.dot_dimension_numbers<[1], [0], [0], [1], [0, 0, 1, 1], [], []>} : vector<4x32xf32>, vector<32x64xf32>, vector<4x64xf32> -> vector<4x64xf32>
    %87 = arith.addf %83, %86 : vector<4x64xf32>
    %88 = arith.negf %87 : vector<4x64xf32>
    %89 = math.exp %88 : vector<4x64xf32>
    %cst_25 = arith.constant 1.000000e+00 : f32
    %90 = vector.broadcast %cst_25 : f32 to vector<4x64xf32>
    %91 = arith.addf %90, %89 : vector<4x64xf32>
    %92 = arith.divf %90, %91 : vector<4x64xf32>
    %93 = math.tanh %87 : vector<4x64xf32>
    %94 = vector.extract_strided_slice %92 {offsets = [0, 0], sizes = [4, 16], strides = [1, 1]} : vector<4x64xf32> to vector<4x16xf32>
    %95 = vector.extract_strided_slice %92 {offsets = [0, 16], sizes = [4, 16], strides = [1, 1]} : vector<4x64xf32> to vector<4x16xf32>
    %96 = vector.extract_strided_slice %93 {offsets = [0, 32], sizes = [4, 16], strides = [1, 1]} : vector<4x64xf32> to vector<4x16xf32>
    %97 = vector.extract_strided_slice %92 {offsets = [0, 48], sizes = [4, 16], strides = [1, 1]} : vector<4x64xf32> to vector<4x16xf32>
    %98 = arith.mulf %95, %78 : vector<4x16xf32>
    %99 = arith.mulf %94, %96 : vector<4x16xf32>
    %100 = arith.addf %98, %99 : vector<4x16xf32>
    %101 = math.tanh %100 : vector<4x16xf32>
    %102 = arith.mulf %97, %101 : vector<4x16xf32>
    %c8_26 = arith.constant 8 : index
    %c0_27 = arith.constant 0 : index
    %103 = vector.load %arg19[%c8_26, %c0_27] : memref<16x128xf32, #tpu.memory_space<vmem>>, vector<2x64xf32>
    %c6_28 = arith.constant 6 : index
    %c64_29 = arith.constant 64 : index
    %104 = vector.load %arg19[%c6_28, %c64_29] : memref<16x128xf32, #tpu.memory_space<vmem>>, vector<2x64xf32>
    %105 = tpu.concatenate %103, %104 in 0 : vector<2x64xf32>, vector<2x64xf32> -> vector<4x64xf32>
    %106 = tpu.concatenate %102, %102 in 1 : vector<4x16xf32>, vector<4x16xf32> -> vector<4x32xf32>
    %107 = arith.mulf %106, %9 : vector<4x32xf32>
    %cst_30 = arith.constant dense<0.000000e+00> : vector<4x64xf32>
    %108 = tpu.matmul %107, %18, %cst_30 {dimension_numbers = #tpu.dot_dimension_numbers<[1], [0], [0], [1], [0, 0, 1, 1], [], []>} : vector<4x32xf32>, vector<32x64xf32>, vector<4x64xf32> -> vector<4x64xf32>
    %109 = arith.addf %105, %108 : vector<4x64xf32>
    %110 = arith.negf %109 : vector<4x64xf32>
    %111 = math.exp %110 : vector<4x64xf32>
    %cst_31 = arith.constant 1.000000e+00 : f32
    %112 = vector.broadcast %cst_31 : f32 to vector<4x64xf32>
    %113 = arith.addf %112, %111 : vector<4x64xf32>
    %114 = arith.divf %112, %113 : vector<4x64xf32>
    %115 = math.tanh %109 : vector<4x64xf32>
    %116 = vector.extract_strided_slice %114 {offsets = [0, 0], sizes = [4, 16], strides = [1, 1]} : vector<4x64xf32> to vector<4x16xf32>
    %117 = vector.extract_strided_slice %114 {offsets = [0, 16], sizes = [4, 16], strides = [1, 1]} : vector<4x64xf32> to vector<4x16xf32>
    %118 = vector.extract_strided_slice %115 {offsets = [0, 32], sizes = [4, 16], strides = [1, 1]} : vector<4x64xf32> to vector<4x16xf32>
    %119 = vector.extract_strided_slice %114 {offsets = [0, 48], sizes = [4, 16], strides = [1, 1]} : vector<4x64xf32> to vector<4x16xf32>
    %120 = arith.mulf %117, %100 : vector<4x16xf32>
    %121 = arith.mulf %116, %118 : vector<4x16xf32>
    %122 = arith.addf %120, %121 : vector<4x16xf32>
    %123 = math.tanh %122 : vector<4x16xf32>
    %124 = arith.mulf %119, %123 : vector<4x16xf32>
    %c10_32 = arith.constant 10 : index
    %c0_33 = arith.constant 0 : index
    %125 = vector.load %arg19[%c10_32, %c0_33] : memref<16x128xf32, #tpu.memory_space<vmem>>, vector<2x64xf32>
    %c4_34 = arith.constant 4 : index
    %c64_35 = arith.constant 64 : index
    %126 = vector.load %arg19[%c4_34, %c64_35] : memref<16x128xf32, #tpu.memory_space<vmem>>, vector<2x64xf32>
    %127 = tpu.concatenate %125, %126 in 0 : vector<2x64xf32>, vector<2x64xf32> -> vector<4x64xf32>
    %128 = tpu.concatenate %124, %124 in 1 : vector<4x16xf32>, vector<4x16xf32> -> vector<4x32xf32>
    %129 = arith.mulf %128, %9 : vector<4x32xf32>
    %cst_36 = arith.constant dense<0.000000e+00> : vector<4x64xf32>
    %130 = tpu.matmul %129, %18, %cst_36 {dimension_numbers = #tpu.dot_dimension_numbers<[1], [0], [0], [1], [0, 0, 1, 1], [], []>} : vector<4x32xf32>, vector<32x64xf32>, vector<4x64xf32> -> vector<4x64xf32>
    %131 = arith.addf %127, %130 : vector<4x64xf32>
    %132 = arith.negf %131 : vector<4x64xf32>
    %133 = math.exp %132 : vector<4x64xf32>
    %cst_37 = arith.constant 1.000000e+00 : f32
    %134 = vector.broadcast %cst_37 : f32 to vector<4x64xf32>
    %135 = arith.addf %134, %133 : vector<4x64xf32>
    %136 = arith.divf %134, %135 : vector<4x64xf32>
    %137 = math.tanh %131 : vector<4x64xf32>
    %138 = vector.extract_strided_slice %136 {offsets = [0, 0], sizes = [4, 16], strides = [1, 1]} : vector<4x64xf32> to vector<4x16xf32>
    %139 = vector.extract_strided_slice %136 {offsets = [0, 16], sizes = [4, 16], strides = [1, 1]} : vector<4x64xf32> to vector<4x16xf32>
    %140 = vector.extract_strided_slice %137 {offsets = [0, 32], sizes = [4, 16], strides = [1, 1]} : vector<4x64xf32> to vector<4x16xf32>
    %141 = vector.extract_strided_slice %136 {offsets = [0, 48], sizes = [4, 16], strides = [1, 1]} : vector<4x64xf32> to vector<4x16xf32>
    %142 = arith.mulf %139, %122 : vector<4x16xf32>
    %143 = arith.mulf %138, %140 : vector<4x16xf32>
    %144 = arith.addf %142, %143 : vector<4x16xf32>
    %145 = math.tanh %144 : vector<4x16xf32>
    %146 = arith.mulf %141, %145 : vector<4x16xf32>
    %c12_38 = arith.constant 12 : index
    %c0_39 = arith.constant 0 : index
    %147 = vector.load %arg19[%c12_38, %c0_39] : memref<16x128xf32, #tpu.memory_space<vmem>>, vector<2x64xf32>
    %c2_40 = arith.constant 2 : index
    %c64_41 = arith.constant 64 : index
    %148 = vector.load %arg19[%c2_40, %c64_41] : memref<16x128xf32, #tpu.memory_space<vmem>>, vector<2x64xf32>
    %149 = tpu.concatenate %147, %148 in 0 : vector<2x64xf32>, vector<2x64xf32> -> vector<4x64xf32>
    %150 = tpu.concatenate %146, %146 in 1 : vector<4x16xf32>, vector<4x16xf32> -> vector<4x32xf32>
    %151 = arith.mulf %150, %9 : vector<4x32xf32>
    %cst_42 = arith.constant dense<0.000000e+00> : vector<4x64xf32>
    %152 = tpu.matmul %151, %18, %cst_42 {dimension_numbers = #tpu.dot_dimension_numbers<[1], [0], [0], [1], [0, 0, 1, 1], [], []>} : vector<4x32xf32>, vector<32x64xf32>, vector<4x64xf32> -> vector<4x64xf32>
    %153 = arith.addf %149, %152 : vector<4x64xf32>
    %154 = arith.negf %153 : vector<4x64xf32>
    %155 = math.exp %154 : vector<4x64xf32>
    %cst_43 = arith.constant 1.000000e+00 : f32
    %156 = vector.broadcast %cst_43 : f32 to vector<4x64xf32>
    %157 = arith.addf %156, %155 : vector<4x64xf32>
    %158 = arith.divf %156, %157 : vector<4x64xf32>
    %159 = math.tanh %153 : vector<4x64xf32>
    %160 = vector.extract_strided_slice %158 {offsets = [0, 0], sizes = [4, 16], strides = [1, 1]} : vector<4x64xf32> to vector<4x16xf32>
    %161 = vector.extract_strided_slice %158 {offsets = [0, 16], sizes = [4, 16], strides = [1, 1]} : vector<4x64xf32> to vector<4x16xf32>
    %162 = vector.extract_strided_slice %159 {offsets = [0, 32], sizes = [4, 16], strides = [1, 1]} : vector<4x64xf32> to vector<4x16xf32>
    %163 = vector.extract_strided_slice %158 {offsets = [0, 48], sizes = [4, 16], strides = [1, 1]} : vector<4x64xf32> to vector<4x16xf32>
    %164 = arith.mulf %161, %144 : vector<4x16xf32>
    %165 = arith.mulf %160, %162 : vector<4x16xf32>
    %166 = arith.addf %164, %165 : vector<4x16xf32>
    %167 = math.tanh %166 : vector<4x16xf32>
    %168 = arith.mulf %163, %167 : vector<4x16xf32>
    %c14_44 = arith.constant 14 : index
    %c0_45 = arith.constant 0 : index
    %169 = vector.load %arg19[%c14_44, %c0_45] : memref<16x128xf32, #tpu.memory_space<vmem>>, vector<2x64xf32>
    %c0_46 = arith.constant 0 : index
    %c64_47 = arith.constant 64 : index
    %170 = vector.load %arg19[%c0_46, %c64_47] : memref<16x128xf32, #tpu.memory_space<vmem>>, vector<2x64xf32>
    %171 = tpu.concatenate %169, %170 in 0 : vector<2x64xf32>, vector<2x64xf32> -> vector<4x64xf32>
    %172 = tpu.concatenate %168, %168 in 1 : vector<4x16xf32>, vector<4x16xf32> -> vector<4x32xf32>
    %173 = arith.mulf %172, %9 : vector<4x32xf32>
    %cst_48 = arith.constant dense<0.000000e+00> : vector<4x64xf32>
    %174 = tpu.matmul %173, %18, %cst_48 {dimension_numbers = #tpu.dot_dimension_numbers<[1], [0], [0], [1], [0, 0, 1, 1], [], []>} : vector<4x32xf32>, vector<32x64xf32>, vector<4x64xf32> -> vector<4x64xf32>
    %175 = arith.addf %171, %174 : vector<4x64xf32>
    %176 = arith.negf %175 : vector<4x64xf32>
    %177 = math.exp %176 : vector<4x64xf32>
    %cst_49 = arith.constant 1.000000e+00 : f32
    %178 = vector.broadcast %cst_49 : f32 to vector<4x64xf32>
    %179 = arith.addf %178, %177 : vector<4x64xf32>
    %180 = arith.divf %178, %179 : vector<4x64xf32>
    %181 = math.tanh %175 : vector<4x64xf32>
    %182 = vector.extract_strided_slice %180 {offsets = [0, 0], sizes = [4, 16], strides = [1, 1]} : vector<4x64xf32> to vector<4x16xf32>
    %183 = vector.extract_strided_slice %180 {offsets = [0, 16], sizes = [4, 16], strides = [1, 1]} : vector<4x64xf32> to vector<4x16xf32>
    %184 = vector.extract_strided_slice %181 {offsets = [0, 32], sizes = [4, 16], strides = [1, 1]} : vector<4x64xf32> to vector<4x16xf32>
    %185 = arith.mulf %183, %166 : vector<4x16xf32>
    %186 = arith.mulf %182, %184 : vector<4x16xf32>
    %187 = arith.addf %185, %186 : vector<4x16xf32>
    %c0_50 = arith.constant 0 : index
    %c0_51 = arith.constant 0 : index
    %188 = vector.load %arg1[%c0_50, %c0_51] : memref<16x32xf32, #tpu.memory_space<vmem>>, vector<16x32xf32>
    %c0_52 = arith.constant 0 : index
    %c0_53 = arith.constant 0 : index
    %189 = vector.load %arg5[%c0_52, %c0_53] : memref<32x128xf32, #tpu.memory_space<vmem>>, vector<32x128xf32>
    %cst_54 = arith.constant dense<0.000000e+00> : vector<16x128xf32>
    %190 = tpu.matmul %188, %189, %cst_54 {dimension_numbers = #tpu.dot_dimension_numbers<[1], [0], [0], [1], [0, 0, 1, 1], [], []>} : vector<16x32xf32>, vector<32x128xf32>, vector<16x128xf32> -> vector<16x128xf32>
    %c0_55 = arith.constant 0 : index
    %c0_56 = arith.constant 0 : index
    %191 = vector.load %arg6[%c0_55, %c0_56] : memref<1x128xf32, #tpu.memory_space<vmem>>, vector<1x128xf32>
    %192 = vector.broadcast %191 : vector<1x128xf32> to vector<16x128xf32>
    %193 = arith.addf %190, %192 : vector<16x128xf32>
    %c0_57 = arith.constant 0 : index
    %c0_58 = arith.constant 0 : index
    %194 = vector.load %arg20[%c0_57, %c0_58] : memref<16x128xf32, #tpu.memory_space<vmem>>, vector<16x128xf32>
    tpu.vector_store %arg20[%c0_57, %c0_58], %193 {strides = array<i32>} : memref<16x128xf32, #tpu.memory_space<vmem>>, vector<16x128xf32>,
    %c0_59 = arith.constant 0 : index
    %c0_60 = arith.constant 0 : index
    %195 = vector.load %arg7[%c0_59, %c0_60] : memref<32x64xf32, #tpu.memory_space<vmem>>, vector<32x64xf32>
    %c0_61 = arith.constant 0 : index
    %c0_62 = arith.constant 0 : index
    %196 = vector.load %arg20[%c0_61, %c0_62] : memref<16x128xf32, #tpu.memory_space<vmem>>, vector<2x64xf32>
    %c14_63 = arith.constant 14 : index
    %c64_64 = arith.constant 64 : index
    %197 = vector.load %arg20[%c14_63, %c64_64] : memref<16x128xf32, #tpu.memory_space<vmem>>, vector<2x64xf32>
    %198 = tpu.concatenate %196, %197 in 0 : vector<2x64xf32>, vector<2x64xf32> -> vector<4x64xf32>
    %199 = arith.negf %198 : vector<4x64xf32>
    %200 = math.exp %199 : vector<4x64xf32>
    %cst_65 = arith.constant 1.000000e+00 : f32
    %201 = vector.broadcast %cst_65 : f32 to vector<4x64xf32>
    %202 = arith.addf %201, %200 : vector<4x64xf32>
    %203 = arith.divf %201, %202 : vector<4x64xf32>
    %204 = math.tanh %198 : vector<4x64xf32>
    %205 = vector.extract_strided_slice %203 {offsets = [0, 0], sizes = [4, 16], strides = [1, 1]} : vector<4x64xf32> to vector<4x16xf32>
    %206 = vector.extract_strided_slice %203 {offsets = [0, 16], sizes = [4, 16], strides = [1, 1]} : vector<4x64xf32> to vector<4x16xf32>
    %207 = vector.extract_strided_slice %204 {offsets = [0, 32], sizes = [4, 16], strides = [1, 1]} : vector<4x64xf32> to vector<4x16xf32>
    %208 = vector.extract_strided_slice %203 {offsets = [0, 48], sizes = [4, 16], strides = [1, 1]} : vector<4x64xf32> to vector<4x16xf32>
    %209 = arith.mulf %206, %187 : vector<4x16xf32>
    %210 = arith.mulf %205, %207 : vector<4x16xf32>
    %211 = arith.addf %209, %210 : vector<4x16xf32>
    %212 = math.tanh %211 : vector<4x16xf32>
    %213 = arith.mulf %208, %212 : vector<4x16xf32>
    %c2_66 = arith.constant 2 : index
    %c0_67 = arith.constant 0 : index
    %214 = vector.load %arg20[%c2_66, %c0_67] : memref<16x128xf32, #tpu.memory_space<vmem>>, vector<2x64xf32>
    %c12_68 = arith.constant 12 : index
    %c64_69 = arith.constant 64 : index
    %215 = vector.load %arg20[%c12_68, %c64_69] : memref<16x128xf32, #tpu.memory_space<vmem>>, vector<2x64xf32>
    %216 = tpu.concatenate %214, %215 in 0 : vector<2x64xf32>, vector<2x64xf32> -> vector<4x64xf32>
    %217 = tpu.concatenate %213, %213 in 1 : vector<4x16xf32>, vector<4x16xf32> -> vector<4x32xf32>
    %218 = arith.mulf %217, %9 : vector<4x32xf32>
    %cst_70 = arith.constant dense<0.000000e+00> : vector<4x64xf32>
    %219 = tpu.matmul %218, %195, %cst_70 {dimension_numbers = #tpu.dot_dimension_numbers<[1], [0], [0], [1], [0, 0, 1, 1], [], []>} : vector<4x32xf32>, vector<32x64xf32>, vector<4x64xf32> -> vector<4x64xf32>
    %220 = arith.addf %216, %219 : vector<4x64xf32>
    %221 = arith.negf %220 : vector<4x64xf32>
    %222 = math.exp %221 : vector<4x64xf32>
    %cst_71 = arith.constant 1.000000e+00 : f32
    %223 = vector.broadcast %cst_71 : f32 to vector<4x64xf32>
    %224 = arith.addf %223, %222 : vector<4x64xf32>
    %225 = arith.divf %223, %224 : vector<4x64xf32>
    %226 = math.tanh %220 : vector<4x64xf32>
    %227 = vector.extract_strided_slice %225 {offsets = [0, 0], sizes = [4, 16], strides = [1, 1]} : vector<4x64xf32> to vector<4x16xf32>
    %228 = vector.extract_strided_slice %225 {offsets = [0, 16], sizes = [4, 16], strides = [1, 1]} : vector<4x64xf32> to vector<4x16xf32>
    %229 = vector.extract_strided_slice %226 {offsets = [0, 32], sizes = [4, 16], strides = [1, 1]} : vector<4x64xf32> to vector<4x16xf32>
    %230 = vector.extract_strided_slice %225 {offsets = [0, 48], sizes = [4, 16], strides = [1, 1]} : vector<4x64xf32> to vector<4x16xf32>
    %231 = arith.mulf %228, %211 : vector<4x16xf32>
    %232 = arith.mulf %227, %229 : vector<4x16xf32>
    %233 = arith.addf %231, %232 : vector<4x16xf32>
    %234 = math.tanh %233 : vector<4x16xf32>
    %235 = arith.mulf %230, %234 : vector<4x16xf32>
    %c4_72 = arith.constant 4 : index
    %c0_73 = arith.constant 0 : index
    %236 = vector.load %arg20[%c4_72, %c0_73] : memref<16x128xf32, #tpu.memory_space<vmem>>, vector<2x64xf32>
    %c10_74 = arith.constant 10 : index
    %c64_75 = arith.constant 64 : index
    %237 = vector.load %arg20[%c10_74, %c64_75] : memref<16x128xf32, #tpu.memory_space<vmem>>, vector<2x64xf32>
    %238 = tpu.concatenate %236, %237 in 0 : vector<2x64xf32>, vector<2x64xf32> -> vector<4x64xf32>
    %239 = tpu.concatenate %235, %235 in 1 : vector<4x16xf32>, vector<4x16xf32> -> vector<4x32xf32>
    %240 = arith.mulf %239, %9 : vector<4x32xf32>
    %cst_76 = arith.constant dense<0.000000e+00> : vector<4x64xf32>
    %241 = tpu.matmul %240, %195, %cst_76 {dimension_numbers = #tpu.dot_dimension_numbers<[1], [0], [0], [1], [0, 0, 1, 1], [], []>} : vector<4x32xf32>, vector<32x64xf32>, vector<4x64xf32> -> vector<4x64xf32>
    %242 = arith.addf %238, %241 : vector<4x64xf32>
    %243 = arith.negf %242 : vector<4x64xf32>
    %244 = math.exp %243 : vector<4x64xf32>
    %cst_77 = arith.constant 1.000000e+00 : f32
    %245 = vector.broadcast %cst_77 : f32 to vector<4x64xf32>
    %246 = arith.addf %245, %244 : vector<4x64xf32>
    %247 = arith.divf %245, %246 : vector<4x64xf32>
    %248 = math.tanh %242 : vector<4x64xf32>
    %249 = vector.extract_strided_slice %247 {offsets = [0, 0], sizes = [4, 16], strides = [1, 1]} : vector<4x64xf32> to vector<4x16xf32>
    %250 = vector.extract_strided_slice %247 {offsets = [0, 16], sizes = [4, 16], strides = [1, 1]} : vector<4x64xf32> to vector<4x16xf32>
    %251 = vector.extract_strided_slice %248 {offsets = [0, 32], sizes = [4, 16], strides = [1, 1]} : vector<4x64xf32> to vector<4x16xf32>
    %252 = vector.extract_strided_slice %247 {offsets = [0, 48], sizes = [4, 16], strides = [1, 1]} : vector<4x64xf32> to vector<4x16xf32>
    %253 = arith.mulf %250, %233 : vector<4x16xf32>
    %254 = arith.mulf %249, %251 : vector<4x16xf32>
    %255 = arith.addf %253, %254 : vector<4x16xf32>
    %256 = math.tanh %255 : vector<4x16xf32>
    %257 = arith.mulf %252, %256 : vector<4x16xf32>
    %c6_78 = arith.constant 6 : index
    %c0_79 = arith.constant 0 : index
    %258 = vector.load %arg20[%c6_78, %c0_79] : memref<16x128xf32, #tpu.memory_space<vmem>>, vector<2x64xf32>
    %c8_80 = arith.constant 8 : index
    %c64_81 = arith.constant 64 : index
    %259 = vector.load %arg20[%c8_80, %c64_81] : memref<16x128xf32, #tpu.memory_space<vmem>>, vector<2x64xf32>
    %260 = tpu.concatenate %258, %259 in 0 : vector<2x64xf32>, vector<2x64xf32> -> vector<4x64xf32>
    %261 = tpu.concatenate %257, %257 in 1 : vector<4x16xf32>, vector<4x16xf32> -> vector<4x32xf32>
    %262 = arith.mulf %261, %9 : vector<4x32xf32>
    %cst_82 = arith.constant dense<0.000000e+00> : vector<4x64xf32>
    %263 = tpu.matmul %262, %195, %cst_82 {dimension_numbers = #tpu.dot_dimension_numbers<[1], [0], [0], [1], [0, 0, 1, 1], [], []>} : vector<4x32xf32>, vector<32x64xf32>, vector<4x64xf32> -> vector<4x64xf32>
    %264 = arith.addf %260, %263 : vector<4x64xf32>
    %265 = arith.negf %264 : vector<4x64xf32>
    %266 = math.exp %265 : vector<4x64xf32>
    %cst_83 = arith.constant 1.000000e+00 : f32
    %267 = vector.broadcast %cst_83 : f32 to vector<4x64xf32>
    %268 = arith.addf %267, %266 : vector<4x64xf32>
    %269 = arith.divf %267, %268 : vector<4x64xf32>
    %270 = math.tanh %264 : vector<4x64xf32>
    %271 = vector.extract_strided_slice %269 {offsets = [0, 0], sizes = [4, 16], strides = [1, 1]} : vector<4x64xf32> to vector<4x16xf32>
    %272 = vector.extract_strided_slice %269 {offsets = [0, 16], sizes = [4, 16], strides = [1, 1]} : vector<4x64xf32> to vector<4x16xf32>
    %273 = vector.extract_strided_slice %270 {offsets = [0, 32], sizes = [4, 16], strides = [1, 1]} : vector<4x64xf32> to vector<4x16xf32>
    %274 = vector.extract_strided_slice %269 {offsets = [0, 48], sizes = [4, 16], strides = [1, 1]} : vector<4x64xf32> to vector<4x16xf32>
    %275 = arith.mulf %272, %255 : vector<4x16xf32>
    %276 = arith.mulf %271, %273 : vector<4x16xf32>
    %277 = arith.addf %275, %276 : vector<4x16xf32>
    %278 = math.tanh %277 : vector<4x16xf32>
    %279 = arith.mulf %274, %278 : vector<4x16xf32>
    %c8_84 = arith.constant 8 : index
    %c0_85 = arith.constant 0 : index
    %280 = vector.load %arg20[%c8_84, %c0_85] : memref<16x128xf32, #tpu.memory_space<vmem>>, vector<2x64xf32>
    %c6_86 = arith.constant 6 : index
    %c64_87 = arith.constant 64 : index
    %281 = vector.load %arg20[%c6_86, %c64_87] : memref<16x128xf32, #tpu.memory_space<vmem>>, vector<2x64xf32>
    %282 = tpu.concatenate %280, %281 in 0 : vector<2x64xf32>, vector<2x64xf32> -> vector<4x64xf32>
    %283 = tpu.concatenate %279, %279 in 1 : vector<4x16xf32>, vector<4x16xf32> -> vector<4x32xf32>
    %284 = arith.mulf %283, %9 : vector<4x32xf32>
    %cst_88 = arith.constant dense<0.000000e+00> : vector<4x64xf32>
    %285 = tpu.matmul %284, %195, %cst_88 {dimension_numbers = #tpu.dot_dimension_numbers<[1], [0], [0], [1], [0, 0, 1, 1], [], []>} : vector<4x32xf32>, vector<32x64xf32>, vector<4x64xf32> -> vector<4x64xf32>
    %286 = arith.addf %282, %285 : vector<4x64xf32>
    %287 = arith.negf %286 : vector<4x64xf32>
    %288 = math.exp %287 : vector<4x64xf32>
    %cst_89 = arith.constant 1.000000e+00 : f32
    %289 = vector.broadcast %cst_89 : f32 to vector<4x64xf32>
    %290 = arith.addf %289, %288 : vector<4x64xf32>
    %291 = arith.divf %289, %290 : vector<4x64xf32>
    %292 = math.tanh %286 : vector<4x64xf32>
    %293 = vector.extract_strided_slice %291 {offsets = [0, 0], sizes = [4, 16], strides = [1, 1]} : vector<4x64xf32> to vector<4x16xf32>
    %294 = vector.extract_strided_slice %291 {offsets = [0, 16], sizes = [4, 16], strides = [1, 1]} : vector<4x64xf32> to vector<4x16xf32>
    %295 = vector.extract_strided_slice %292 {offsets = [0, 32], sizes = [4, 16], strides = [1, 1]} : vector<4x64xf32> to vector<4x16xf32>
    %296 = vector.extract_strided_slice %291 {offsets = [0, 48], sizes = [4, 16], strides = [1, 1]} : vector<4x64xf32> to vector<4x16xf32>
    %297 = arith.mulf %294, %277 : vector<4x16xf32>
    %298 = arith.mulf %293, %295 : vector<4x16xf32>
    %299 = arith.addf %297, %298 : vector<4x16xf32>
    %300 = math.tanh %299 : vector<4x16xf32>
    %301 = arith.mulf %296, %300 : vector<4x16xf32>
    %c10_90 = arith.constant 10 : index
    %c0_91 = arith.constant 0 : index
    %302 = vector.load %arg20[%c10_90, %c0_91] : memref<16x128xf32, #tpu.memory_space<vmem>>, vector<2x64xf32>
    %c4_92 = arith.constant 4 : index
    %c64_93 = arith.constant 64 : index
    %303 = vector.load %arg20[%c4_92, %c64_93] : memref<16x128xf32, #tpu.memory_space<vmem>>, vector<2x64xf32>
    %304 = tpu.concatenate %302, %303 in 0 : vector<2x64xf32>, vector<2x64xf32> -> vector<4x64xf32>
    %305 = tpu.concatenate %301, %301 in 1 : vector<4x16xf32>, vector<4x16xf32> -> vector<4x32xf32>
    %306 = arith.mulf %305, %9 : vector<4x32xf32>
    %cst_94 = arith.constant dense<0.000000e+00> : vector<4x64xf32>
    %307 = tpu.matmul %306, %195, %cst_94 {dimension_numbers = #tpu.dot_dimension_numbers<[1], [0], [0], [1], [0, 0, 1, 1], [], []>} : vector<4x32xf32>, vector<32x64xf32>, vector<4x64xf32> -> vector<4x64xf32>
    %308 = arith.addf %304, %307 : vector<4x64xf32>
    %309 = arith.negf %308 : vector<4x64xf32>
    %310 = math.exp %309 : vector<4x64xf32>
    %cst_95 = arith.constant 1.000000e+00 : f32
    %311 = vector.broadcast %cst_95 : f32 to vector<4x64xf32>
    %312 = arith.addf %311, %310 : vector<4x64xf32>
    %313 = arith.divf %311, %312 : vector<4x64xf32>
    %314 = math.tanh %308 : vector<4x64xf32>
    %315 = vector.extract_strided_slice %313 {offsets = [0, 0], sizes = [4, 16], strides = [1, 1]} : vector<4x64xf32> to vector<4x16xf32>
    %316 = vector.extract_strided_slice %313 {offsets = [0, 16], sizes = [4, 16], strides = [1, 1]} : vector<4x64xf32> to vector<4x16xf32>
    %317 = vector.extract_strided_slice %314 {offsets = [0, 32], sizes = [4, 16], strides = [1, 1]} : vector<4x64xf32> to vector<4x16xf32>
    %318 = vector.extract_strided_slice %313 {offsets = [0, 48], sizes = [4, 16], strides = [1, 1]} : vector<4x64xf32> to vector<4x16xf32>
    %319 = arith.mulf %316, %299 : vector<4x16xf32>
    %320 = arith.mulf %315, %317 : vector<4x16xf32>
    %321 = arith.addf %319, %320 : vector<4x16xf32>
    %322 = math.tanh %321 : vector<4x16xf32>
    %323 = arith.mulf %318, %322 : vector<4x16xf32>
    %c12_96 = arith.constant 12 : index
    %c0_97 = arith.constant 0 : index
    %324 = vector.load %arg20[%c12_96, %c0_97] : memref<16x128xf32, #tpu.memory_space<vmem>>, vector<2x64xf32>
    %c2_98 = arith.constant 2 : index
    %c64_99 = arith.constant 64 : index
    %325 = vector.load %arg20[%c2_98, %c64_99] : memref<16x128xf32, #tpu.memory_space<vmem>>, vector<2x64xf32>
    %326 = tpu.concatenate %324, %325 in 0 : vector<2x64xf32>, vector<2x64xf32> -> vector<4x64xf32>
    %327 = tpu.concatenate %323, %323 in 1 : vector<4x16xf32>, vector<4x16xf32> -> vector<4x32xf32>
    %328 = arith.mulf %327, %9 : vector<4x32xf32>
    %cst_100 = arith.constant dense<0.000000e+00> : vector<4x64xf32>
    %329 = tpu.matmul %328, %195, %cst_100 {dimension_numbers = #tpu.dot_dimension_numbers<[1], [0], [0], [1], [0, 0, 1, 1], [], []>} : vector<4x32xf32>, vector<32x64xf32>, vector<4x64xf32> -> vector<4x64xf32>
    %330 = arith.addf %326, %329 : vector<4x64xf32>
    %331 = arith.negf %330 : vector<4x64xf32>
    %332 = math.exp %331 : vector<4x64xf32>
    %cst_101 = arith.constant 1.000000e+00 : f32
    %333 = vector.broadcast %cst_101 : f32 to vector<4x64xf32>
    %334 = arith.addf %333, %332 : vector<4x64xf32>
    %335 = arith.divf %333, %334 : vector<4x64xf32>
    %336 = math.tanh %330 : vector<4x64xf32>
    %337 = vector.extract_strided_slice %335 {offsets = [0, 0], sizes = [4, 16], strides = [1, 1]} : vector<4x64xf32> to vector<4x16xf32>
    %338 = vector.extract_strided_slice %335 {offsets = [0, 16], sizes = [4, 16], strides = [1, 1]} : vector<4x64xf32> to vector<4x16xf32>
    %339 = vector.extract_strided_slice %336 {offsets = [0, 32], sizes = [4, 16], strides = [1, 1]} : vector<4x64xf32> to vector<4x16xf32>
    %340 = vector.extract_strided_slice %335 {offsets = [0, 48], sizes = [4, 16], strides = [1, 1]} : vector<4x64xf32> to vector<4x16xf32>
    %341 = arith.mulf %338, %321 : vector<4x16xf32>
    %342 = arith.mulf %337, %339 : vector<4x16xf32>
    %343 = arith.addf %341, %342 : vector<4x16xf32>
    %344 = math.tanh %343 : vector<4x16xf32>
    %345 = arith.mulf %340, %344 : vector<4x16xf32>
    %c14_102 = arith.constant 14 : index
    %c0_103 = arith.constant 0 : index
    %346 = vector.load %arg20[%c14_102, %c0_103] : memref<16x128xf32, #tpu.memory_space<vmem>>, vector<2x64xf32>
    %c0_104 = arith.constant 0 : index
    %c64_105 = arith.constant 64 : index
    %347 = vector.load %arg20[%c0_104, %c64_105] : memref<16x128xf32, #tpu.memory_space<vmem>>, vector<2x64xf32>
    %348 = tpu.concatenate %346, %347 in 0 : vector<2x64xf32>, vector<2x64xf32> -> vector<4x64xf32>
    %349 = tpu.concatenate %345, %345 in 1 : vector<4x16xf32>, vector<4x16xf32> -> vector<4x32xf32>
    %350 = arith.mulf %349, %9 : vector<4x32xf32>
    %cst_106 = arith.constant dense<0.000000e+00> : vector<4x64xf32>
    %351 = tpu.matmul %350, %195, %cst_106 {dimension_numbers = #tpu.dot_dimension_numbers<[1], [0], [0], [1], [0, 0, 1, 1], [], []>} : vector<4x32xf32>, vector<32x64xf32>, vector<4x64xf32> -> vector<4x64xf32>
    %352 = arith.addf %348, %351 : vector<4x64xf32>
    %353 = arith.negf %352 : vector<4x64xf32>
    %354 = math.exp %353 : vector<4x64xf32>
    %cst_107 = arith.constant 1.000000e+00 : f32
    %355 = vector.broadcast %cst_107 : f32 to vector<4x64xf32>
    %356 = arith.addf %355, %354 : vector<4x64xf32>
    %357 = arith.divf %355, %356 : vector<4x64xf32>
    %358 = math.tanh %352 : vector<4x64xf32>
    %359 = vector.extract_strided_slice %357 {offsets = [0, 0], sizes = [4, 16], strides = [1, 1]} : vector<4x64xf32> to vector<4x16xf32>
    %360 = vector.extract_strided_slice %357 {offsets = [0, 16], sizes = [4, 16], strides = [1, 1]} : vector<4x64xf32> to vector<4x16xf32>
    %361 = vector.extract_strided_slice %358 {offsets = [0, 32], sizes = [4, 16], strides = [1, 1]} : vector<4x64xf32> to vector<4x16xf32>
    %362 = vector.extract_strided_slice %357 {offsets = [0, 48], sizes = [4, 16], strides = [1, 1]} : vector<4x64xf32> to vector<4x16xf32>
    %363 = arith.mulf %360, %343 : vector<4x16xf32>
    %364 = arith.mulf %359, %361 : vector<4x16xf32>
    %365 = arith.addf %363, %364 : vector<4x16xf32>
    %366 = math.tanh %365 : vector<4x16xf32>
    %367 = arith.mulf %362, %366 : vector<4x16xf32>
    %368 = vector.extract_strided_slice %213 {offsets = [0, 0], sizes = [2, 16], strides = [1, 1]} : vector<4x16xf32> to vector<2x16xf32>
    %369 = vector.extract_strided_slice %367 {offsets = [2, 0], sizes = [2, 16], strides = [1, 1]} : vector<4x16xf32> to vector<2x16xf32>
    %370 = tpu.concatenate %368, %369 in 1 : vector<2x16xf32>, vector<2x16xf32> -> vector<2x32xf32>
    %371 = vector.extract_strided_slice %235 {offsets = [0, 0], sizes = [2, 16], strides = [1, 1]} : vector<4x16xf32> to vector<2x16xf32>
    %372 = vector.extract_strided_slice %345 {offsets = [2, 0], sizes = [2, 16], strides = [1, 1]} : vector<4x16xf32> to vector<2x16xf32>
    %373 = tpu.concatenate %371, %372 in 1 : vector<2x16xf32>, vector<2x16xf32> -> vector<2x32xf32>
    %374 = vector.extract_strided_slice %257 {offsets = [0, 0], sizes = [2, 16], strides = [1, 1]} : vector<4x16xf32> to vector<2x16xf32>
    %375 = vector.extract_strided_slice %323 {offsets = [2, 0], sizes = [2, 16], strides = [1, 1]} : vector<4x16xf32> to vector<2x16xf32>
    %376 = tpu.concatenate %374, %375 in 1 : vector<2x16xf32>, vector<2x16xf32> -> vector<2x32xf32>
    %377 = vector.extract_strided_slice %279 {offsets = [0, 0], sizes = [2, 16], strides = [1, 1]} : vector<4x16xf32> to vector<2x16xf32>
    %378 = vector.extract_strided_slice %301 {offsets = [2, 0], sizes = [2, 16], strides = [1, 1]} : vector<4x16xf32> to vector<2x16xf32>
    %379 = tpu.concatenate %377, %378 in 1 : vector<2x16xf32>, vector<2x16xf32> -> vector<2x32xf32>
    %380 = vector.extract_strided_slice %301 {offsets = [0, 0], sizes = [2, 16], strides = [1, 1]} : vector<4x16xf32> to vector<2x16xf32>
    %381 = vector.extract_strided_slice %279 {offsets = [2, 0], sizes = [2, 16], strides = [1, 1]} : vector<4x16xf32> to vector<2x16xf32>
    %382 = tpu.concatenate %380, %381 in 1 : vector<2x16xf32>, vector<2x16xf32> -> vector<2x32xf32>
    %383 = vector.extract_strided_slice %323 {offsets = [0, 0], sizes = [2, 16], strides = [1, 1]} : vector<4x16xf32> to vector<2x16xf32>
    %384 = vector.extract_strided_slice %257 {offsets = [2, 0], sizes = [2, 16], strides = [1, 1]} : vector<4x16xf32> to vector<2x16xf32>
    %385 = tpu.concatenate %383, %384 in 1 : vector<2x16xf32>, vector<2x16xf32> -> vector<2x32xf32>
    %386 = vector.extract_strided_slice %345 {offsets = [0, 0], sizes = [2, 16], strides = [1, 1]} : vector<4x16xf32> to vector<2x16xf32>
    %387 = vector.extract_strided_slice %235 {offsets = [2, 0], sizes = [2, 16], strides = [1, 1]} : vector<4x16xf32> to vector<2x16xf32>
    %388 = tpu.concatenate %386, %387 in 1 : vector<2x16xf32>, vector<2x16xf32> -> vector<2x32xf32>
    %389 = vector.extract_strided_slice %367 {offsets = [0, 0], sizes = [2, 16], strides = [1, 1]} : vector<4x16xf32> to vector<2x16xf32>
    %390 = vector.extract_strided_slice %213 {offsets = [2, 0], sizes = [2, 16], strides = [1, 1]} : vector<4x16xf32> to vector<2x16xf32>
    %391 = tpu.concatenate %389, %390 in 1 : vector<2x16xf32>, vector<2x16xf32> -> vector<2x32xf32>
    %392 = tpu.concatenate %370, %373, %376, %379, %382, %385, %388, %391 in 0 : vector<2x32xf32>, vector<2x32xf32>, vector<2x32xf32>, vector<2x32xf32>, vector<2x32xf32>, vector<2x32xf32>, vector<2x32xf32>, vector<2x32xf32> -> vector<16x32xf32>
    %c0_108 = arith.constant 0 : index
    %c0_109 = arith.constant 0 : index
    %393 = vector.load %arg8[%c0_108, %c0_109] : memref<32x16xf32, #tpu.memory_space<vmem>>, vector<32x16xf32>
    %cst_110 = arith.constant dense<0.000000e+00> : vector<16x16xf32>
    %394 = tpu.matmul %392, %393, %cst_110 {dimension_numbers = #tpu.dot_dimension_numbers<[1], [0], [0], [1], [0, 0, 1, 1], [], []>} : vector<16x32xf32>, vector<32x16xf32>, vector<16x16xf32> -> vector<16x16xf32>
    %c0_111 = arith.constant 0 : index
    %c0_112 = arith.constant 0 : index
    %395 = vector.load %arg9[%c0_111, %c0_112] : memref<1x16xf32, #tpu.memory_space<vmem>>, vector<1x16xf32>
    %396 = vector.broadcast %395 : vector<1x16xf32> to vector<16x16xf32>
    %397 = arith.addf %394, %396 : vector<16x16xf32>
    %398 = math.tanh %397 : vector<16x16xf32>
    %c0_113 = arith.constant 0 : index
    %c0_114 = arith.constant 0 : index
    %399 = vector.load %arg10[%c0_113, %c0_114] : memref<16x1xf32, #tpu.memory_space<vmem>>, vector<16x1xf32>
    %cst_115 = arith.constant dense<0.000000e+00> : vector<16x1xf32>
    %400 = tpu.matmul %398, %399, %cst_115 {dimension_numbers = #tpu.dot_dimension_numbers<[1], [0], [0], [1], [0, 0, 1, 1], [], []>} : vector<16x16xf32>, vector<16x1xf32>, vector<16x1xf32> -> vector<16x1xf32>
    %c0_116 = arith.constant 0 : index
    %c0_117 = arith.constant 0 : index
    %401 = vector.load %arg11[%c0_116, %c0_117] : memref<1x1xf32, #tpu.memory_space<vmem>>, vector<1x1xf32>
    %402 = vector.broadcast %401 : vector<1x1xf32> to vector<16x1xf32>
    %403 = arith.addf %400, %402 : vector<16x1xf32>
    %c0_118 = arith.constant 0 : index
    %c0_119 = arith.constant 0 : index
    %404 = vector.load %arg15[%c0_118, %c0_119] : memref<16x2xf32, #tpu.memory_space<vmem>>, vector<16x2xf32>
    %cst_120 = arith.constant 0.000000e+00 : f32
    %405 = vector.broadcast %cst_120 : f32 to vector<16x2xf32>
    %406 = arith.cmpf ogt, %404, %405 : vector<16x2xf32>
    %cst_121 = arith.constant 0xFF800000 : f32
    %407 = vector.shape_cast %403 : vector<16x1xf32> to vector<16x1xf32>
    %408 = vector.broadcast %407 : vector<16x1xf32> to vector<16x2xf32>
    %409 = vector.broadcast %cst_121 : f32 to vector<16x2xf32>
    %410 = arith.select %406, %408, %409 : vector<16x2xi1>, vector<16x2xf32>
    %cst_122 = arith.constant dense<0xFF800000> : vector<2xf32>
    %411 = vector.multi_reduction <maximumf>, %410, %cst_122 [0] : vector<16x2xf32> to vector<2xf32>
    %412 = vector.shape_cast %411 : vector<2xf32> to vector<1x2xf32>
    %413 = vector.broadcast %412 : vector<1x2xf32> to vector<16x2xf32>
    %414 = arith.mulf %404, %413 : vector<16x2xf32>
    %cst_123 = arith.constant dense<0.000000e+00> : vector<16xf32>
    %415 = vector.multi_reduction <add>, %414, %cst_123 [1] : vector<16x2xf32> to vector<16xf32>
    %416 = vector.shape_cast %415 : vector<16xf32> to vector<16x1xf32>
    %417 = arith.subf %403, %416 : vector<16x1xf32>
    %418 = math.exp %417 : vector<16x1xf32>
    %419 = vector.broadcast %418 : vector<16x1xf32> to vector<16x32xf32>
    %420 = arith.mulf %392, %419 : vector<16x32xf32>
    %421 = tpu.concatenate %420, %418 in 1 : vector<16x32xf32>, vector<16x1xf32> -> vector<16x33xf32>
    %c0_124 = arith.constant 0 : index
    %c0_125 = arith.constant 0 : index
    %422 = vector.load %arg14[%c0_124, %c0_125] : memref<2x16xf32, #tpu.memory_space<vmem>>, vector<2x16xf32>
    %cst_126 = arith.constant dense<0.000000e+00> : vector<2x33xf32>
    %423 = tpu.matmul %422, %421, %cst_126 {dimension_numbers = #tpu.dot_dimension_numbers<[1], [0], [0], [1], [0, 0, 1, 1], [], []>} : vector<2x16xf32>, vector<16x33xf32>, vector<2x33xf32> -> vector<2x33xf32>
    %424 = vector.extract_strided_slice %423 {offsets = [0, 0], sizes = [2, 32], strides = [1, 1]} : vector<2x33xf32> to vector<2x32xf32>
    %425 = vector.extract_strided_slice %423 {offsets = [0, 32], sizes = [2, 1], strides = [1, 1]} : vector<2x33xf32> to vector<2x1xf32>
    %426 = vector.broadcast %425 : vector<2x1xf32> to vector<2x32xf32>
    %427 = arith.divf %424, %426 : vector<2x32xf32>
    %c0_127 = arith.constant 0 : index
    %c0_128 = arith.constant 0 : index
    %428 = vector.load %arg12[%c0_127, %c0_128] : memref<32x2xf32, #tpu.memory_space<vmem>>, vector<32x2xf32>
    %cst_129 = arith.constant dense<0.000000e+00> : vector<2x2xf32>
    %429 = tpu.matmul %427, %428, %cst_129 {dimension_numbers = #tpu.dot_dimension_numbers<[1], [0], [0], [1], [0, 0, 1, 1], [], []>} : vector<2x32xf32>, vector<32x2xf32>, vector<2x2xf32> -> vector<2x2xf32>
    %c0_130 = arith.constant 0 : index
    %c0_131 = arith.constant 0 : index
    %430 = vector.load %arg13[%c0_130, %c0_131] : memref<1x2xf32, #tpu.memory_space<vmem>>, vector<1x2xf32>
    %431 = vector.broadcast %430 : vector<1x2xf32> to vector<2x2xf32>
    %432 = arith.addf %429, %431 : vector<2x2xf32>
    %c0_132 = arith.constant 0 : index
    %c0_133 = arith.constant 0 : index
    %433 = vector.load %arg17[%c0_132, %c0_133] : memref<2x2xf32, #tpu.memory_space<vmem>>, vector<2x2xf32>
    tpu.vector_store %arg17[%c0_132, %c0_133], %432 {strides = array<i32>} : memref<2x2xf32, #tpu.memory_space<vmem>>, vector<2x2xf32>,
    %cst_134 = arith.constant dense<0xFF800000> : vector<2xf32>
    %434 = vector.multi_reduction <maximumf>, %432, %cst_134 [1] : vector<2x2xf32> to vector<2xf32>
    %435 = vector.shape_cast %434 : vector<2xf32> to vector<2x1xf32>
    %436 = vector.broadcast %435 : vector<2x1xf32> to vector<2x2xf32>
    %437 = arith.subf %432, %436 : vector<2x2xf32>
    %438 = math.exp %437 : vector<2x2xf32>
    %cst_135 = arith.constant dense<0.000000e+00> : vector<2xf32>
    %439 = vector.multi_reduction <add>, %438, %cst_135 [1] : vector<2x2xf32> to vector<2xf32>
    %440 = vector.shape_cast %439 : vector<2xf32> to vector<2x1xf32>
    %441 = math.log %440 : vector<2x1xf32>
    %442 = arith.addf %435, %441 : vector<2x1xf32>
    %443 = tpu.iota {dimensions = array<i32: 1>} : vector<2x2xi32>
    %c0_136 = arith.constant 0 : index
    %c0_137 = arith.constant 0 : index
    %444 = vector.load %arg16[%c0_136, %c0_137] : memref<2x1xi32, #tpu.memory_space<vmem>>, vector<2x1xi32>
    %445 = vector.broadcast %444 : vector<2x1xi32> to vector<2x2xi32>
    %446 = arith.cmpi eq, %443, %445 : vector<2x2xi32>
    %cst_138 = arith.constant 0.000000e+00 : f32
    %447 = vector.broadcast %cst_138 : f32 to vector<2x2xf32>
    %448 = arith.select %446, %432, %447 : vector<2x2xi1>, vector<2x2xf32>
    %cst_139 = arith.constant dense<0.000000e+00> : vector<2xf32>
    %449 = vector.multi_reduction <add>, %448, %cst_139 [1] : vector<2x2xf32> to vector<2xf32>
    %450 = vector.shape_cast %449 : vector<2xf32> to vector<2x1xf32>
    %451 = arith.subf %442, %450 : vector<2x1xf32>
    %cst_140 = arith.constant dense<0.000000e+00> : vector<1xf32>
    %452 = vector.multi_reduction <add>, %451, %cst_140 [0] : vector<2x1xf32> to vector<1xf32>
    %453 = vector.shape_cast %452 : vector<1xf32> to vector<1x1xf32>
    %cst_141 = arith.constant 2.000000e+00 : f32
    %454 = vector.broadcast %cst_141 : f32 to vector<1x1xf32>
    %455 = arith.divf %453, %454 : vector<1x1xf32>
    %c0_142 = arith.constant 0 : index
    %c0_143 = arith.constant 0 : index
    %456 = vector.load %arg18[%c0_142, %c0_143] : memref<1x1xf32, #tpu.memory_space<vmem>>, vector<1x1xf32>
    tpu.vector_store %arg18[%c0_142, %c0_143], %455 {strides = array<i32>} : memref<1x1xf32, #tpu.memory_space<vmem>>, vector<1x1xf32>,
    return
  }
}

</mosaic_0001>

<bundles_post_ra>
// kernel: tpu_custom_call.1
= control target key start
LH: loop header
LB: loop body
LE: loop exit
PB: predicated region body
PF: predicated region fallthrough
CT: control target
= control target key end

     0   :  { %s3971_s0 = inlined_call_operand.hbm [shape: f32[16,32], index: 0, kind: input, shape index: {}]   ;;  %s3972_s1 = inlined_call_operand.hbm [shape: f32[16,32], index: 1, kind: input, shape index: {}]   ;;  %s3973_s2 = inlined_call_operand.vmem [shape: f32[32,128], index: 2, kind: input, shape index: {}]   ;;  %s3974_s3 = inlined_call_operand.vmem [shape: f32[1,128], index: 3, kind: input, shape index: {}]   ;;  %s3975_s4 = inlined_call_operand.vmem [shape: f32[32,64], index: 4, kind: input, shape index: {}]   ;;  %s3976_s5 = inlined_call_operand.vmem [shape: f32[32,128], index: 5, kind: input, shape index: {}]   ;;  %s3977_s6 = inlined_call_operand.hbm [shape: f32[1,128], index: 6, kind: input, shape index: {}]   ;;  %s3978_s7 = inlined_call_operand.vmem [shape: f32[32,64], index: 7, kind: input, shape index: {}]   ;;  %s3979_s8 = inlined_call_operand.vmem [shape: f32[32,16], index: 8, kind: input, shape index: {}]   ;;  %s3980_s9 = inlined_call_operand.vmem [shape: f32[1,16], index: 9, kind: input, shape index: {}]   ;;  %s3981_s10 = inlined_call_operand.vmem [shape: f32[16,1], index: 10, kind: input, shape index: {}]   ;;  %s3982_s11 = inlined_call_operand.<no memory space> [shape: f32[1,1], index: 11, kind: input, shape index: {}]   ;;  %s3983_s12 = inlined_call_operand.vmem [shape: f32[32,2], index: 12, kind: input, shape index: {}]   ;;  %s3984_s13 = inlined_call_operand.vmem [shape: f32[1,2], index: 13, kind: input, shape index: {}]   ;;  %s3985_s14 = inlined_call_operand.vmem [shape: f32[2,16], index: 14, kind: input, shape index: {}]   ;;  %s3986_s15 = inlined_call_operand.vmem [shape: f32[16,2], index: 15, kind: input, shape index: {}]   ;;  %s3987_s16 = inlined_call_operand.vmem [shape: s32[2,1], index: 16, kind: input, shape index: {}]   ;;  %s3988_s17 = inlined_call_operand.hbm [shape: f32[2,2], index: 17, kind: output, shape index: {0}]   ;;  %s3989_s18 = inlined_call_operand.hbm [shape: f32[1,1], index: 18, kind: output, shape index: {1}]  }
   0x1   :  { %3993 = sst [smem:[#allocation18_spill]] %s3971_s0  ;;  %v24_v0 = vstv %s3982_s11 }
   0x2   :  { %3994 = sst [smem:[#allocation19_spill]] %s3972_s1  ;;  %25 = vst [vmem:[#allocation4] sm:$0x1] %v24_v0 }
   0x3   :  { %3995 = sst [smem:[#allocation20_spill]] %s3973_s2 }
   0x4   :  { %26 = vsyncpa [#allocation6], 0 }
   0x5   :  { %27 = vsyncpa [#allocation9], 0 }
   0x6   :  { %28 = vsyncpa [#allocation7], 0 }
   0x7   :  { %29 = vsyncpa [#allocation13], 0  ;;  %s3274_s29 = smov [#allocation8]   ;;  %s3275_s0 = smov [#allocation5]  }
   0x8   :  { %s47_s30 = sshll.u32 %s3274_s29, 4  ;;  %s35_s19 = sshll.u32 %s3275_s0, 4  ;;  %s48_s30 = int_to_ptr.vmem [resolvable:$true] %s47_s30  ;;  %s3390_s19 = int_to_ptr.vmem [resolvable:$true] %s35_s19 }
   0x9   :  { %s3996_s21 = sld [smem:[#allocation19_spill]] }
   0xf   :  { %s3156_s22 = scalar_lea.hbm %s3996_s21, 256 }
  0x10   :  { %p3157_p0 = scmp.ne.s32.totalorder %s3996_s21, %s3156_s22  ;;  %p3160_p1 = scmp.lt.u32.totalorder %s3156_s22, %s3996_s21 }
  0x12   :  { %p3162_p2 = pnand %p3160_p1, %p3157_p0 }
  0x14   :  { %3165 = shalt.err (!%p3162_p2)
}
  0x15   :  { %s3166_s25 = scalar_lea.vmem %s48_s30, 256  ;;  %p3171_p4 = scmp.lt.s32.totalorder %s48_s30, %s48_s30 }
  0x16   :  { %p3167_p3 = scmp.ne.s32.totalorder %s48_s30, %s3166_s25  ;;  %p3172_p5 = scmp.lt.s32.totalorder %s3166_s25, %s3166_s25 }
  0x18   :  { %p3173_p6 = por %p3172_p5, %p3171_p4 }
  0x1a   :  { %p3174_p7 = pnand %p3173_p6, %p3167_p3 }
  0x1c   :  { %3177 = shalt.err (!%p3174_p7)
}
  0x1d   :  { %s3276_s26 = smov 128   ;;  %s3277_s27 = smov 8  }
  0x1e   :  { %53 = dma.hbm_to_vmem [thread:$0]  %s3996_s21, 256, %s48_s30, [#allocation9], %s3276_s26, %s3276_s26, %s3277_s27  }
  0x1f   :  { %s3997_s20 = sld [smem:[#allocation18_spill]] }
  0x25   :  { %s3178_s2 = scalar_lea.hbm %s3997_s20, 256 }
  0x26   :  { %p3179_p8 = scmp.ne.s32.totalorder %s3997_s20, %s3178_s2  ;;  %p3182_p9 = scmp.lt.u32.totalorder %s3178_s2, %s3997_s20 }
  0x28   :  { %p3184_p10 = pnand %p3182_p9, %p3179_p8 }
  0x2a   :  { %3187 = shalt.err (!%p3184_p10)
}
  0x2b   :  { %s3188_s25 = scalar_lea.vmem %s3390_s19, 256  ;;  %p3193_p12 = scmp.lt.s32.totalorder %s3390_s19, %s3390_s19 }
  0x2c   :  { %p3189_p11 = scmp.ne.s32.totalorder %s3390_s19, %s3188_s25  ;;  %p3194_p13 = scmp.lt.s32.totalorder %s3188_s25, %s3188_s25 }
  0x2e   :  { %p3195_p0 = por %p3194_p13, %p3193_p12 }
  0x30   :  { %p3196_p1 = pnand %p3195_p0, %p3189_p11 }
  0x32   :  { %3199 = shalt.err (!%p3196_p1)
}
  0x33   :  { %41 = dma.hbm_to_vmem [thread:$0]  %s3997_s20, 256, %s3390_s19, [#allocation6], %s3276_s26, %s3276_s26, %s3277_s27  }
  0x34   :  { %s3278_s28 = smov [#allocation10]   ;;  %s3200_s2 = scalar_lea.hbm %s3977_s6, 16 }
  0x35   :  { %s68_s29 = sshll.u32 %s3278_s28, 4  ;;  %p3201_p2 = scmp.ne.s32.totalorder %s3977_s6, %s3200_s2  ;;  %s69_s29 = int_to_ptr.vmem [resolvable:$true] %s68_s29 }
  0x36   :  { %p3204_p3 = scmp.lt.u32.totalorder %s3200_s2, %s3977_s6 }
  0x38   :  { %p3206_p4 = pnand %p3204_p3, %p3201_p2 }
  0x3a   :  { %3209 = shalt.err (!%p3206_p4)
}
  0x3b   :  { %s3210_s25 = scalar_lea.vmem %s69_s29, 16  ;;  %s3214_s19 = scalar_lea.vmem %s69_s29, 32 }
  0x3c   :  { %p3211_p5 = scmp.ne.s32.totalorder %s69_s29, %s3210_s25  ;;  %p3215_p6 = scmp.lt.s32.totalorder %s69_s29, %s69_s29 }
  0x3d   :  { %p3216_p7 = scmp.lt.s32.totalorder %s3214_s19, %s3210_s25 }
  0x3f   :  { %p3217_p8 = por %p3216_p7, %p3215_p6 }
  0x41   :  { %p3218_p9 = pnand %p3217_p8, %p3211_p5 }
  0x43   :  { %3221 = shalt.err (!%p3218_p9)
}
  0x44   :  { %71 = dma.hbm_to_vmem [thread:$0]  %s3977_s6, 16, %s69_s29, [#allocation9]  }
  0x45   :  { %3266 = dma.done.wait [#allocation6], 256  }
  0x46   :  { %3267 = vsyncadd [#allocation6], 4294967040 }
  0x47   :  { %3268 = dma.done.wait [#allocation9], 272  }
  0x48   :  { %3269 = vsyncadd [#allocation9], 4294967024  ;;  %vm124_vm0 = vcmask 261120   ;;  %s3998_s21 = sld [smem:[#allocation20_spill]]  ;;  %v111_v6 = vld [vmem:[#allocation5] sm:$0xff]  ;;  %v112_v8 = vld [vmem:[#allocation5 + $0x8] sm:$0xff]  ;;  %v101_v42 = vlaneseq }
  0x49   :  { %2664 = vmatprep.mubr.msk.f32.mxu0 %vm124_vm0, %v111_v6  ;;  %v2511_v9 = vld [vmem:[%s3974_s3] ss:$0 sm:$0xff]  ;;  %s3279_s11 = smov 64   ;;  %vm219_vm1 = vcmask 1041408   ;;  %s3280_s3 = smov 96   ;;  %v209_v30 = vld [vmem:[%s3975_s4 + $0x8] sm:$0xff] }
  0x4a   :  { %s3281_s24 = smov 16   ;;  %v208_v29 = vld [vmem:[%s3975_s4] sm:$0xff]  ;;  %v3282_v31 = vmov 0.0|0.0   ;;  %s3283_s20 = smov 32   ;;  %v210_v34 = vld [vmem:[%s3975_s4 + $0x10] sm:$0xff]  ;;  %v211_v35 = vld [vmem:[%s3975_s4 + $0x18] sm:$0xff] }
  0x4b   :  { %2876 = vmatprep.subr.bf16.mxu1 %v3282_v31  ;;  %v3470_v32 = vpack.c.bf16 %v209_v30, %v208_v29  ;;  %v3484_v36 = vpack.c.bf16 %v211_v35, %v210_v34  ;;  %vm3284_vm2 = vmmov 0   ;;  %v3285_v37 = vmov 0.0   ;;  %s3286_s4 = smov 80  }
  0x4c   :  { %2675 = vmatprep.mubr.msk.f32.mxu1 %vm3284_vm2, %v3285_v37  ;;  %v102_v43 = vshrl.u32 %v101_v42, 7  ;;  %v3500_v44 = vand.u32 127, %v101_v42  ;;  %vm3287_vm6 = vmmov 1   ;;  %vm260_vm8 = vcmask 130048  }
  0x4d   :  { %2878 = vmatpush3.bf16.msra.mxu1 %v3470_v32  ;;  %vm2031_vm9 = vcmask 1045504   ;;  %vm2029_vm10 = vcmask 1043456   ;;  %vm2236_vm12 = vcmask 15360   ;;  %vm2445_vm14 = vcmask 9216  }
  0x4e   :  { %v113_v1 = vld [vmem:[%s3998_s21] sm:$0xff]  ;;  %v114_v2 = vld [vmem:[%s3998_s21 + $0x8] sm:$0xff]  ;;  %v115_v3 = vld [vmem:[%s3998_s21 + $0x10] sm:$0xff]  ;;  %2879 = vmatprep.subr.bf16.mxu1 %v3282_v31  ;;  %vm105_vm3 = vcmp.lt.s32.totalorder %v102_v43, 2  ;;  %vm106_vm4 = vcmp.lt.s32.totalorder %v3500_v44, 16 }
  0x4f   :  { %v2868_v4 = vpack.c.bf16 %v114_v2, %v113_v1  ;;  %v116_v5 = vld [vmem:[%s3998_s21 + $0x18] sm:$0xff]  ;;  %vm107_vm5 = vmxor %vm105_vm3, %vm106_vm4 }
  0x50   :  { %v2872_v7 = vpack.c.bf16 %v116_v5, %v115_v3  ;;  %vm108_vm7 = vmxor %vm107_vm5, %vm3287_vm6 }
  0x51   :  { %2869 = vmatprep.subr.bf16.mxu0 %v2868_v4  ;;  %2881 = vmatpush3.bf16.msra.mxu1 %v3484_v36  ;;  %v3504_v45 = vsel %vm108_vm7, 1.0, %v3285_v37 }
  0x52   :  { %2871 = vmatpush3.bf16.msra.mxu0 %v2868_v4  ;;  %2888 = vmatprep.subr.bf16.mxu1 %v3282_v31 }
  0x53   :  { %2873 = vmatprep.subr.bf16.mxu0 %v2872_v7 }
  0x56   :  { %2875 = vmatpush3.bf16.msra.mxu0 %v2872_v7 }
  0x57   :  { %2882 = vmatprep.subr.bf16.mxu0 %v3282_v31 }
  0x59   :  { %2665 = vmatmul.mubr.msk.f32.vlgmr.msra.gmra.mrb[0].mxu0 %vm124_vm0, %v112_v8 }
  0x5a   :  { %2884 = vmatpush3.bf16.msra.mxu0 %v3470_v32  ;;  %2686 = vmatprep.mubr.msk.f32.mxu0 %vm3284_vm2, %v3285_v37 }
  0x5b   :  { %2885 = vmatprep.subr.bf16.mxu0 %v3282_v31 }
  0x5e   :  { %2887 = vmatpush3.bf16.msra.mxu0 %v3484_v36 }
  0x5f   :  { %2894 = vmatprep.subr.bf16.mxu0 %v3282_v31 }
 0x12c   :  { %v2666_v10 = vpop.f32.mrb[0].mxu0 }
 0x12d   :  { %v203_v11 = vadd.f32 %v2666_v10, %v2511_v9  ;;  %v197_v12 = vpop.f32.mrb[1].mxu0 }
 0x12e   :  { %v198_v13 = vadd.f32 %v2511_v9, %v197_v12 }
 0x12f   :  { %207 = vst [vmem:[#allocation2 + $0x8] sm:$0xff] %v203_v11 }
 0x130   :  { %206 = vst [vmem:[#allocation2] sm:$0xff] %v198_v13 }
 0x136   :  { %v3450_v14 = vld [vmem:[#allocation2 + $0xe] sm:$0x3]  ;;  %v3494_v40 = vld [vmem:[#allocation2 + $0xc] sm:$0x3]  ;;  %v3523_v5 = vld [vmem:[#allocation2 + $0xa] sm:$0x3] }
 0x137   :  { %v215_v15 = vrot.slane %v3450_v14, 6  ;;  %v3454_v17 = vld [vmem:[#allocation2] sm:$0x3]  ;;  %v248_v41 = vrot.slane %v3494_v40, 6  ;;  %v3515_v51 = vld [vmem:[#allocation2 + $0x2] sm:$0x3] }
 0x138   :  { %v364_v6 = vrot.slane %v3523_v5, 6  ;;  %v3538_v12 = vld [vmem:[#allocation2 + $0x4] sm:$0x3]  ;;  %v477_v34 = vld [vmem:[#allocation2 + $0x8] sm:$0x3] }
 0x139   :  { %216 = vrot.lane.b32.xlu0 %v215_v15, %s3279_s11  ;;  %v479_v35 = vrot.slane %v477_v34, 6 }
 0x1ab   :  { %v217_v16 = vpop.permute.xlu0 %216 }
 0x1ac   :  { %v220_v18 = vsel %vm219_vm1, %v3454_v17, %v217_v16 }
 0x1ad   :  { %3016 = vtanh.f32 %v220_v18  ;;  %v2514_v20 = vmul.f32 -1.442695, %v220_v18 }
 0x1af   :  { %3018 = vpow2.f32 %v2514_v20 }
 0x1b7   :  { %v3017_v19 = vpop.eup %3016 }
 0x1b8   :  { %230 = vrot.lane.b32.xlu0 %v3017_v19, %s3280_s3 }
 0x1b9   :  { %v3019_v21 = vpop.eup %3018 }
 0x1ba   :  { %v224_v22 = vadd.f32 1.0, %v3019_v21 }
 0x1bc   :  { %3020 = vrcp.f32 %v224_v22 }
 0x1c6   :  { %v3021_v23 = vpop.eup %3020 }
 0x1c7   :  { %v228_v26 = vmul.f32 0.0, %v3021_v23 }
 0x22a   :  { %v231_v24 = vpop.permute.xlu0 %230 }
 0x22b   :  { %v233_v25 = vmul.f32 %v3021_v23, %v231_v24 }
 0x22d   :  { %235 = vrot.lane.b32.xlu1 %v233_v25, %s3281_s24 }
 0x29f   :  { %v236_v27 = vpop.permute.xlu1 %235 }
 0x2a0   :  { %v3460_v28 = vadd.f32 %v236_v27, %v228_v26 }
 0x2a2   :  { %3022 = vtanh.f32 %v3460_v28 }
 0x2ac   :  { %v3023_v33 = vpop.eup %3022 }
 0x2ad   :  { %241 = vrot.lane.b32.xlu1 %v3023_v33, %s3283_s20 }
 0x31f   :  { %v242_v38 = vpop.permute.xlu1 %241 }
 0x320   :  { %v244_v39 = vmul.f32 %v3021_v23, %v242_v38 }
 0x322   :  { %257 = vrot.lane.b32.xlu1 %v244_v39, %s3280_s3  ;;  %254 = vrot.lane.b32.xlu0 %v244_v39, %s3286_s4 }
 0x326   :  { %249 = vrot.lane.b32.xlu0 %v248_v41, %s3279_s11 }
 0x394   :  { %v258_v46 = vpop.permute.xlu1 %257  ;;  %v255_v47 = vpop.permute.xlu0 %254 }
 0x395   :  { %v261_v48 = vsel %vm260_vm8, %v255_v47, %v258_v46  ;;  %v476_v46 = vld [vmem:[#allocation2 + $0x6] sm:$0x3] }
 0x396   :  { %v262_v49 = vmul.f32 %v3504_v45, %v261_v48 }
 0x398   :  { %2676 = vmatmul.mubr.msk.f32.vlgmr.msra.gmra.mrb[0].mxu1 %vm124_vm0, %v262_v49  ;;  %v250_v50 = vpop.permute.xlu0 %249 }
 0x399   :  { %2890 = vmatpush3.bf16.msra.mxu1 %v3470_v32  ;;  %2697 = vmatprep.mubr.msk.f32.mxu1 %vm3284_vm2, %v3285_v37  ;;  %v252_v52 = vsel %vm219_vm1, %v3515_v51, %v250_v50 }
 0x39a   :  { %2891 = vmatprep.subr.bf16.mxu1 %v3282_v31 }
 0x39d   :  { %2893 = vmatpush3.bf16.msra.mxu1 %v3484_v36 }
 0x39e   :  { %2900 = vmatprep.subr.bf16.mxu1 %v3282_v31 }
 0x46b   :  { %v332_v53 = vpop.f32.mrb[0].mxu1 }
 0x46c   :  { %v336_v54 = vadd.f32 %v332_v53, %v252_v52  ;;  %v2677_v55 = vpop.f32.mrb[1].mxu1 }
 0x46e   :  { %3024 = vtanh.f32 %v336_v54  ;;  %v2516_v57 = vmul.f32 -1.442695, %v336_v54 }
 0x470   :  { %3026 = vpow2.f32 %v2516_v57 }
 0x478   :  { %v3025_v56 = vpop.eup %3024 }
 0x479   :  { %346 = vrot.lane.b32.xlu1 %v3025_v56, %s3280_s3 }
 0x47a   :  { %v3027_v58 = vpop.eup %3026 }
 0x47b   :  { %v340_v59 = vadd.f32 1.0, %v3027_v58 }
 0x47d   :  { %3028 = vrcp.f32 %v340_v59 }
 0x487   :  { %v3029_v60 = vpop.eup %3028 }
 0x488   :  { %v344_v63 = vmul.f32 %v3029_v60, %v3460_v28 }
 0x4eb   :  { %v347_v61 = vpop.permute.xlu1 %346 }
 0x4ec   :  { %v349_v62 = vmul.f32 %v3029_v60, %v347_v61 }
 0x4ee   :  { %351 = vrot.lane.b32.xlu0 %v349_v62, %s3281_s24 }
 0x560   :  { %v352_v0 = vpop.permute.xlu0 %351 }
 0x561   :  { %v354_v1 = vadd.f32 %v352_v0, %v344_v63 }
 0x563   :  { %3030 = vtanh.f32 %v354_v1 }
 0x56d   :  { %v3031_v2 = vpop.eup %3030 }
 0x56e   :  { %357 = vrot.lane.b32.xlu1 %v3031_v2, %s3283_s20 }
 0x5e0   :  { %v358_v3 = vpop.permute.xlu1 %357 }
 0x5e1   :  { %v360_v4 = vmul.f32 %v3029_v60, %v358_v3 }
 0x5e3   :  { %373 = vrot.lane.b32.xlu1 %v360_v4, %s3280_s3  ;;  %370 = vrot.lane.b32.xlu0 %v360_v4, %s3286_s4 }
 0x5e7   :  { %365 = vrot.lane.b32.xlu0 %v364_v6, %s3279_s11 }
 0x655   :  { %v374_v7 = vpop.permute.xlu1 %373  ;;  %v371_v8 = vpop.permute.xlu0 %370 }
 0x656   :  { %v376_v9 = vsel %vm260_vm8, %v371_v8, %v374_v7 }
 0x657   :  { %v377_v10 = vmul.f32 %v3504_v45, %v376_v9 }
 0x659   :  { %2687 = vmatmul.mubr.msk.f32.vlgmr.msra.gmra.mrb[2].mxu0 %vm124_vm0, %v377_v10  ;;  %v366_v11 = vpop.permute.xlu0 %365 }
 0x65a   :  { %2896 = vmatpush3.bf16.msra.mxu0 %v3470_v32  ;;  %2708 = vmatprep.mubr.msk.f32.mxu0 %vm3284_vm2, %v3285_v37  ;;  %v368_v13 = vsel %vm219_vm1, %v3538_v12, %v366_v11 }
 0x65b   :  { %2897 = vmatprep.subr.bf16.mxu0 %v3282_v31 }
 0x65e   :  { %2899 = vmatpush3.bf16.msra.mxu0 %v3484_v36 }
 0x65f   :  { %2906 = vmatprep.subr.bf16.mxu0 %v3282_v31 }
 0x72c   :  { %v447_v15 = vpop.f32.mrb[2].mxu0 }
 0x72d   :  { %v451_v16 = vadd.f32 %v447_v15, %v368_v13  ;;  %v2688_v18 = vpop.f32.mrb[3].mxu0 }
 0x72f   :  { %3032 = vtanh.f32 %v451_v16  ;;  %v2518_v20 = vmul.f32 -1.442695, %v451_v16 }
 0x731   :  { %3034 = vpow2.f32 %v2518_v20 }
 0x739   :  { %v3033_v19 = vpop.eup %3032 }
 0x73a   :  { %461 = vrot.lane.b32.xlu1 %v3033_v19, %s3280_s3 }
 0x73b   :  { %v3035_v21 = vpop.eup %3034 }
 0x73c   :  { %v455_v22 = vadd.f32 1.0, %v3035_v21 }
 0x73e   :  { %3036 = vrcp.f32 %v455_v22 }
 0x748   :  { %v3037_v23 = vpop.eup %3036 }
 0x749   :  { %v459_v26 = vmul.f32 %v3037_v23, %v354_v1  ;;  %v592_v1 = vrot.slane %v476_v46, 6 }
 0x7ac   :  { %v462_v24 = vpop.permute.xlu1 %461 }
 0x7ad   :  { %v464_v25 = vmul.f32 %v3037_v23, %v462_v24 }
 0x7af   :  { %466 = vrot.lane.b32.xlu0 %v464_v25, %s3281_s24 }
 0x821   :  { %v467_v27 = vpop.permute.xlu0 %466 }
 0x822   :  { %v469_v28 = vadd.f32 %v467_v27, %v459_v26 }
 0x824   :  { %3038 = vtanh.f32 %v469_v28 }
 0x82e   :  { %v3039_v29 = vpop.eup %3038 }
 0x82f   :  { %472 = vrot.lane.b32.xlu1 %v3039_v29, %s3283_s20 }
 0x8a1   :  { %v473_v30 = vpop.permute.xlu1 %472 }
 0x8a2   :  { %v475_v33 = vmul.f32 %v3037_v23, %v473_v30 }
 0x8a4   :  { %488 = vrot.lane.b32.xlu1 %v475_v33, %s3280_s3  ;;  %485 = vrot.lane.b32.xlu0 %v475_v33, %s3286_s4 }
 0x8a8   :  { %480 = vrot.lane.b32.xlu0 %v479_v35, %s3279_s11 }
 0x916   :  { %v489_v38 = vpop.permute.xlu1 %488  ;;  %v486_v39 = vpop.permute.xlu0 %485 }
 0x917   :  { %v491_v41 = vsel %vm260_vm8, %v486_v39, %v489_v38 }
 0x918   :  { %v492_v42 = vmul.f32 %v3504_v45, %v491_v41 }
 0x91a   :  { %2698 = vmatmul.mubr.msk.f32.vlgmr.msra.gmra.mrb[2].mxu1 %vm124_vm0, %v492_v42  ;;  %v481_v43 = vpop.permute.xlu0 %480 }
 0x91b   :  { %2902 = vmatpush3.bf16.msra.mxu1 %v3470_v32  ;;  %2719 = vmatprep.mubr.msk.f32.mxu1 %vm3284_vm2, %v3285_v37  ;;  %v483_v47 = vsel %vm219_vm1, %v476_v46, %v481_v43 }
 0x91c   :  { %2903 = vmatprep.subr.bf16.mxu1 %v3282_v31 }
 0x91f   :  { %2905 = vmatpush3.bf16.msra.mxu1 %v3484_v36 }
 0x920   :  { %2912 = vmatprep.subr.bf16.mxu1 %v3282_v31 }
 0x9ed   :  { %v562_v48 = vpop.f32.mrb[2].mxu1 }
 0x9ee   :  { %v566_v49 = vadd.f32 %v562_v48, %v483_v47  ;;  %v2699_v50 = vpop.f32.mrb[3].mxu1 }
 0x9f0   :  { %3040 = vtanh.f32 %v566_v49  ;;  %v2520_v53 = vmul.f32 -1.442695, %v566_v49 }
 0x9f2   :  { %3042 = vpow2.f32 %v2520_v53 }
 0x9fa   :  { %v3041_v52 = vpop.eup %3040 }
 0x9fb   :  { %576 = vrot.lane.b32.xlu1 %v3041_v52, %s3280_s3 }
 0x9fc   :  { %v3043_v54 = vpop.eup %3042 }
 0x9fd   :  { %v570_v55 = vadd.f32 1.0, %v3043_v54 }
 0x9ff   :  { %3044 = vrcp.f32 %v570_v55  ;;  %v818_v55 = vrot.slane %v3515_v51, 6  ;;  %v1039_v51 = vld [vmem:[%s3976_s5] sm:$0xff] }
 0xa09   :  { %v3045_v56 = vpop.eup %3044 }
 0xa0a   :  { %v574_v59 = vmul.f32 %v3045_v56, %v469_v28  ;;  %v705_v28 = vrot.slane %v3538_v12, 6 }
 0xa6d   :  { %v577_v57 = vpop.permute.xlu1 %576 }
 0xa6e   :  { %v579_v58 = vmul.f32 %v3045_v56, %v577_v57 }
 0xa70   :  { %581 = vrot.lane.b32.xlu0 %v579_v58, %s3281_s24 }
 0xae2   :  { %v582_v60 = vpop.permute.xlu0 %581 }
 0xae3   :  { %v584_v61 = vadd.f32 %v582_v60, %v574_v59 }
 0xae5   :  { %3046 = vtanh.f32 %v584_v61 }
 0xaef   :  { %v3047_v62 = vpop.eup %3046 }
 0xaf0   :  { %587 = vrot.lane.b32.xlu1 %v3047_v62, %s3283_s20 }
 0xb62   :  { %v588_v63 = vpop.permute.xlu1 %587 }
 0xb63   :  { %v590_v0 = vmul.f32 %v3045_v56, %v588_v63 }
 0xb65   :  { %601 = vrot.lane.b32.xlu1 %v590_v0, %s3280_s3  ;;  %598 = vrot.lane.b32.xlu0 %v590_v0, %s3286_s4 }
 0xb69   :  { %593 = vrot.lane.b32.xlu0 %v592_v1, %s3279_s11  ;;  %v1040_v1 = vld [vmem:[%s3976_s5 + $0x8] sm:$0xff] }
 0xbd7   :  { %v602_v2 = vpop.permute.xlu1 %601  ;;  %v599_v3 = vpop.permute.xlu0 %598 }
 0xbd8   :  { %v604_v4 = vsel %vm260_vm8, %v599_v3, %v602_v2  ;;  %v1041_v2 = vld [vmem:[%s3976_s5 + $0x10] sm:$0xff]  ;;  %v2918_v3 = vpack.c.bf16 %v1040_v1, %v1039_v51  ;;  %v1133_v1 = vld [vmem:[%s3978_s7] sm:$0xff] }
 0xbd9   :  { %v605_v6 = vmul.f32 %v3504_v45, %v604_v4  ;;  %v1037_v4 = vld [vmem:[#allocation8] sm:$0xff] }
 0xbdb   :  { %2709 = vmatmul.mubr.msk.f32.vlgmr.msra.gmra.mrb[4].mxu0 %vm124_vm0, %v605_v6  ;;  %v594_v7 = vpop.permute.xlu0 %593 }
 0xbdc   :  { %2908 = vmatpush3.bf16.msra.mxu0 %v3470_v32  ;;  %2730 = vmatprep.mubr.msk.f32.mxu0 %vm3284_vm2, %v3285_v37  ;;  %v596_v8 = vsel %vm219_vm1, %v477_v34, %v594_v7  ;;  %v1038_v7 = vld [vmem:[#allocation8 + $0x8] sm:$0xff] }
 0xbdd   :  { %2909 = vmatprep.subr.bf16.mxu0 %v3282_v31 }
 0xbe0   :  { %2911 = vmatpush3.bf16.msra.mxu0 %v3484_v36 }
 0xbe1   :  { %2919 = vmatprep.subr.bf16.mxu0 %v2918_v3 }
 0xcae   :  { %v675_v9 = vpop.f32.mrb[4].mxu0 }
 0xcaf   :  { %v679_v10 = vadd.f32 %v675_v9, %v596_v8  ;;  %v2710_v11 = vpop.f32.mrb[5].mxu0 }
 0xcb1   :  { %3048 = vtanh.f32 %v679_v10  ;;  %v2522_v15 = vmul.f32 -1.442695, %v679_v10 }
 0xcb3   :  { %3050 = vpow2.f32 %v2522_v15 }
 0xcbb   :  { %v3049_v13 = vpop.eup %3048 }
 0xcbc   :  { %689 = vrot.lane.b32.xlu1 %v3049_v13, %s3280_s3 }
 0xcbd   :  { %v3051_v16 = vpop.eup %3050 }
 0xcbe   :  { %v683_v18 = vadd.f32 1.0, %v3051_v16 }
 0xcc0   :  { %3052 = vrcp.f32 %v683_v18  ;;  %v2529_v18 = vld [vmem:[#allocation10] ss:$0 sm:$0xff] }
 0xcca   :  { %v3053_v19 = vpop.eup %3052 }
 0xccb   :  { %v687_v22 = vmul.f32 %v3053_v19, %v584_v61 }
 0xd2e   :  { %v690_v20 = vpop.permute.xlu1 %689 }
 0xd2f   :  { %v692_v21 = vmul.f32 %v3053_v19, %v690_v20 }
 0xd31   :  { %694 = vrot.lane.b32.xlu0 %v692_v21, %s3281_s24 }
 0xda3   :  { %v695_v23 = vpop.permute.xlu0 %694 }
 0xda4   :  { %v697_v24 = vadd.f32 %v695_v23, %v687_v22 }
 0xda6   :  { %3054 = vtanh.f32 %v697_v24 }
 0xdb0   :  { %v3055_v25 = vpop.eup %3054 }
 0xdb1   :  { %700 = vrot.lane.b32.xlu1 %v3055_v25, %s3283_s20 }
 0xe23   :  { %v701_v26 = vpop.permute.xlu1 %700 }
 0xe24   :  { %v703_v27 = vmul.f32 %v3053_v19, %v701_v26 }
 0xe26   :  { %714 = vrot.lane.b32.xlu1 %v703_v27, %s3280_s3  ;;  %711 = vrot.lane.b32.xlu0 %v703_v27, %s3286_s4 }
 0xe2a   :  { %706 = vrot.lane.b32.xlu0 %v705_v28, %s3279_s11 }
 0xe98   :  { %v715_v29 = vpop.permute.xlu1 %714  ;;  %v712_v30 = vpop.permute.xlu0 %711 }
 0xe99   :  { %v717_v33 = vsel %vm260_vm8, %v712_v30, %v715_v29 }
 0xe9a   :  { %v718_v34 = vmul.f32 %v3504_v45, %v717_v33  ;;  %v931_v33 = vrot.slane %v3454_v17, 6 }
 0xe9c   :  { %2720 = vmatmul.mubr.msk.f32.vlgmr.msra.gmra.mrb[4].mxu1 %vm124_vm0, %v718_v34  ;;  %v707_v12 = vpop.permute.xlu0 %706 }
 0xe9d   :  { %2914 = vmatpush3.bf16.msra.mxu1 %v3470_v32  ;;  %2741 = vmatprep.mubr.msk.f32.mxu1 %vm3284_vm2, %v3285_v37  ;;  %v709_v35 = vsel %vm219_vm1, %v3523_v5, %v707_v12 }
 0xe9e   :  { %2915 = vmatprep.subr.bf16.mxu1 %v3282_v31 }
 0xea1   :  { %2917 = vmatpush3.bf16.msra.mxu1 %v3484_v36 }
 0xea2   :  { %2926 = vmatprep.subr.bf16.mxu1 %v3282_v31 }
 0xf6f   :  { %v788_v38 = vpop.f32.mrb[4].mxu1 }
 0xf70   :  { %v792_v39 = vadd.f32 %v788_v38, %v709_v35  ;;  %v2721_v41 = vpop.f32.mrb[5].mxu1 }
 0xf72   :  { %3056 = vtanh.f32 %v792_v39  ;;  %v2524_v32 = vmul.f32 -1.442695, %v792_v39 }
 0xf74   :  { %3058 = vpow2.f32 %v2524_v32 }
 0xf7c   :  { %v3057_v42 = vpop.eup %3056 }
 0xf7d   :  { %802 = vrot.lane.b32.xlu1 %v3057_v42, %s3280_s3 }
 0xf7e   :  { %v3059_v43 = vpop.eup %3058 }
 0xf7f   :  { %v796_v46 = vadd.f32 1.0, %v3059_v43 }
 0xf81   :  { %3060 = vrcp.f32 %v796_v46 }
 0xf8b   :  { %v3061_v47 = vpop.eup %3060 }
 0xf8c   :  { %v800_v49 = vmul.f32 %v3061_v47, %v697_v24 }
 0xfef   :  { %v803_v36 = vpop.permute.xlu1 %802 }
 0xff0   :  { %v805_v48 = vmul.f32 %v3061_v47, %v803_v36 }
 0xff2   :  { %807 = vrot.lane.b32.xlu0 %v805_v48, %s3281_s24 }
0x1064   :  { %v808_v50 = vpop.permute.xlu0 %807 }
0x1065   :  { %v810_v5 = vadd.f32 %v808_v50, %v800_v49 }
0x1067   :  { %3062 = vtanh.f32 %v810_v5 }
0x1071   :  { %v3063_v52 = vpop.eup %3062 }
0x1072   :  { %813 = vrot.lane.b32.xlu1 %v3063_v52, %s3283_s20 }
0x10e4   :  { %v814_v53 = vpop.permute.xlu1 %813 }
0x10e5   :  { %v816_v54 = vmul.f32 %v3061_v47, %v814_v53 }
0x10e7   :  { %827 = vrot.lane.b32.xlu1 %v816_v54, %s3280_s3  ;;  %824 = vrot.lane.b32.xlu0 %v816_v54, %s3286_s4 }
0x10eb   :  { %819 = vrot.lane.b32.xlu0 %v818_v55, %s3279_s11 }
0x1159   :  { %v828_v56 = vpop.permute.xlu1 %827  ;;  %v825_v57 = vpop.permute.xlu0 %824 }
0x115a   :  { %v830_v58 = vsel %vm260_vm8, %v825_v57, %v828_v56 }
0x115b   :  { %v831_v59 = vmul.f32 %v3504_v45, %v830_v58 }
0x115d   :  { %2731 = vmatmul.mubr.msk.f32.vlgmr.msra.gmra.mrb[6].mxu0 %vm124_vm0, %v831_v59  ;;  %v820_v60 = vpop.permute.xlu0 %819 }
0x115e   :  { %v822_v61 = vsel %vm219_vm1, %v3494_v40, %v820_v60  ;;  %v1042_v40 = vld [vmem:[%s3976_s5 + $0x18] sm:$0xff]  ;;  %2752 = vmatprep.mubr.msk.f32.mxu0 %vm124_vm0, %v1037_v4  ;;  %2921 = vmatpush3.bf16.msra.mxu0 %v2918_v3  ;;  %v1135_v4 = vld [vmem:[%s3978_s7 + $0x10] sm:$0xff] }
0x115f   :  { %v2922_v6 = vpack.c.bf16 %v1042_v40, %v1041_v2  ;;  %v1134_v2 = vld [vmem:[%s3978_s7 + $0x8] sm:$0xff] }
0x1160   :  { %v3652_v3 = vpack.c.bf16 %v1134_v2, %v1133_v1 }
0x1161   :  { %2923 = vmatprep.subr.bf16.mxu0 %v2922_v6 }
0x1162   :  { %2925 = vmatpush3.bf16.msra.mxu0 %v2922_v6  ;;  %v1136_v6 = vld [vmem:[%s3978_s7 + $0x18] sm:$0xff] }
0x1163   :  { %2932 = vmatprep.subr.bf16.mxu0 %v3282_v31 }
0x1165   :  { %2753 = vmatmul.mubr.msk.f32.vlgmr.msra.gmra.mrb[8].mxu0 %vm124_vm0, %v1038_v7  ;;  %v3665_v7 = vpack.c.bf16 %v1136_v6, %v1135_v4 }
0x1166   :  { %2774 = vmatprep.mubr.msk.f32.mxu0 %vm3284_vm2, %v3285_v37  ;;  %2934 = vmatpush3.bf16.msra.mxu0 %v3652_v3 }
0x1167   :  { %2935 = vmatprep.subr.bf16.mxu0 %v3282_v31 }
0x116a   :  { %2937 = vmatpush3.bf16.msra.mxu0 %v3665_v7 }
0x116b   :  { %2944 = vmatprep.subr.bf16.mxu0 %v3282_v31 }
0x1230   :  { %v901_v62 = vpop.f32.mrb[6].mxu0 }
0x1231   :  { %v905_v63 = vadd.f32 %v901_v62, %v822_v61  ;;  %v2732_v0 = vpop.f32.mrb[7].mxu0 }
0x1233   :  { %3064 = vtanh.f32 %v905_v63  ;;  %v2526_v9 = vmul.f32 -1.442695, %v905_v63 }
0x1235   :  { %3066 = vpow2.f32 %v2526_v9 }
0x1238   :  { %v2754_v19 = vpop.f32.mrb[8].mxu0 }
0x1239   :  { %v1128_v20 = vadd.f32 %v2754_v19, %v2529_v18  ;;  %v1122_v24 = vpop.f32.mrb[9].mxu0 }
0x123a   :  { %v1123_v25 = vadd.f32 %v2529_v18, %v1122_v24 }
0x123b   :  { %1132 = vst [vmem:[#allocation3 + $0x8] sm:$0xff] %v1128_v20 }
0x123c   :  { %1131 = vst [vmem:[#allocation3] sm:$0xff] %v1123_v25 }
0x123d   :  { %v3065_v8 = vpop.eup %3064 }
0x123e   :  { %915 = vrot.lane.b32.xlu1 %v3065_v8, %s3280_s3 }
0x123f   :  { %v3067_v10 = vpop.eup %3066 }
0x1240   :  { %v909_v11 = vadd.f32 1.0, %v3067_v10 }
0x1242   :  { %3068 = vrcp.f32 %v909_v11  ;;  %v3623_v28 = vld [vmem:[#allocation3 + $0xe] sm:$0x3]  ;;  %v3673_v10 = vld [vmem:[#allocation3 + $0xc] sm:$0x3]  ;;  %v1400_v2 = vld [vmem:[#allocation3 + $0x8] sm:$0x3] }
0x1243   :  { %v1140_v30 = vrot.slane %v3623_v28, 6  ;;  %v3633_v39 = vld [vmem:[#allocation3] sm:$0x3]  ;;  %v1172_v11 = vrot.slane %v3673_v10, 6  ;;  %v3693_v20 = vld [vmem:[#allocation3 + $0x2] sm:$0x3] }
0x124c   :  { %v3069_v13 = vpop.eup %3068 }
0x124d   :  { %v913_v21 = vmul.f32 %v3069_v13, %v810_v5 }
0x12b0   :  { %v916_v15 = vpop.permute.xlu1 %915 }
0x12b1   :  { %v918_v16 = vmul.f32 %v3069_v13, %v916_v15 }
0x12b3   :  { %920 = vrot.lane.b32.xlu0 %v918_v16, %s3281_s24 }
0x1325   :  { %v921_v22 = vpop.permute.xlu0 %920 }
0x1326   :  { %v923_v23 = vadd.f32 %v921_v22, %v913_v21 }
0x1328   :  { %3070 = vtanh.f32 %v923_v23 }
0x1332   :  { %v3071_v26 = vpop.eup %3070 }
0x1333   :  { %926 = vrot.lane.b32.xlu1 %v3071_v26, %s3283_s20 }
0x13a5   :  { %v927_v27 = vpop.permute.xlu1 %926 }
0x13a6   :  { %v929_v29 = vmul.f32 %v3069_v13, %v927_v27 }
0x13a8   :  { %940 = vrot.lane.b32.xlu1 %v929_v29, %s3280_s3  ;;  %937 = vrot.lane.b32.xlu0 %v929_v29, %s3286_s4 }
0x13ac   :  { %1141 = vrot.lane.b32.xlu1 %v1140_v30, %s3279_s11  ;;  %932 = vrot.lane.b32.xlu0 %v931_v33, %s3279_s11 }
0x141a   :  { %v941_v34 = vpop.permute.xlu1 %940  ;;  %v938_v12 = vpop.permute.xlu0 %937 }
0x141b   :  { %v943_v35 = vsel %vm260_vm8, %v938_v12, %v941_v34 }
0x141c   :  { %v944_v38 = vmul.f32 %v3504_v45, %v943_v35 }
0x141e   :  { %v1142_v41 = vpop.permute.xlu1 %1141  ;;  %2742 = vmatmul.mubr.msk.f32.vlgmr.msra.gmra.mrb[6].mxu1 %vm124_vm0, %v944_v38  ;;  %v933_v49 = vpop.permute.xlu0 %932 }
0x141f   :  { %v1144_v42 = vsel %vm219_vm1, %v3633_v39, %v1142_v41  ;;  %2763 = vmatprep.mubr.msk.f32.mxu1 %vm3284_vm2, %v3285_v37  ;;  %v935_v50 = vsel %vm219_vm1, %v3450_v14, %v933_v49  ;;  %2928 = vmatpush3.bf16.msra.mxu1 %v3652_v3 }
0x1420   :  { %3072 = vtanh.f32 %v1144_v42  ;;  %v2532_v32 = vmul.f32 -1.442695, %v1144_v42  ;;  %2929 = vmatprep.subr.bf16.mxu1 %v3282_v31 }
0x1422   :  { %3074 = vpow2.f32 %v2532_v32  ;;  %v3702_v32 = vld [vmem:[#allocation3 + $0xa] sm:$0x3] }
0x1423   :  { %2931 = vmatpush3.bf16.msra.mxu1 %v3665_v7 }
0x1424   :  { %2938 = vmatprep.subr.bf16.mxu1 %v3282_v31 }
0x142a   :  { %v3073_v17 = vpop.eup %3072 }
0x142b   :  { %1154 = vrot.lane.b32.xlu1 %v3073_v17, %s3280_s3 }
0x142c   :  { %v3075_v43 = vpop.eup %3074 }
0x142d   :  { %v1148_v46 = vadd.f32 1.0, %v3075_v43  ;;  %v1287_v43 = vrot.slane %v3702_v32, 6 }
0x142f   :  { %3076 = vrcp.f32 %v1148_v46 }
0x1439   :  { %v3077_v47 = vpop.eup %3076 }
0x149d   :  { %v1155_v36 = vpop.permute.xlu1 %1154 }
0x149e   :  { %v1157_v48 = vmul.f32 %v3077_v47, %v1155_v36 }
0x14a0   :  { %1159 = vrot.lane.b32.xlu1 %v1157_v48, %s3281_s24 }
0x14f1   :  { %v1014_v5 = vpop.f32.mrb[6].mxu1 }
0x14f2   :  { %v1018_v52 = vadd.f32 %v1014_v5, %v935_v50  ;;  %v2743_v53 = vpop.f32.mrb[7].mxu1  ;;  %v3722_v50 = vld [vmem:[#allocation3 + $0x4] sm:$0x3] }
0x14f4   :  { %3078 = vtanh.f32 %v1018_v52  ;;  %v2528_v55 = vmul.f32 -1.442695, %v1018_v52 }
0x14f6   :  { %3080 = vpow2.f32 %v2528_v55 }
0x14fe   :  { %v3079_v54 = vpop.eup %3078 }
0x14ff   :  { %1028 = vrot.lane.b32.xlu0 %v3079_v54, %s3280_s3 }
0x1500   :  { %v3081_v56 = vpop.eup %3080 }
0x1501   :  { %v1022_v57 = vadd.f32 1.0, %v3081_v56 }
0x1503   :  { %3082 = vrcp.f32 %v1022_v57 }
0x150d   :  { %v3083_v58 = vpop.eup %3082 }
0x150e   :  { %v1026_v61 = vmul.f32 %v3083_v58, %v923_v23 }
0x1512   :  { %v1160_v0 = vpop.permute.xlu1 %1159 }
0x1571   :  { %v1029_v59 = vpop.permute.xlu0 %1028 }
0x1572   :  { %v1031_v60 = vmul.f32 %v3083_v58, %v1029_v59 }
0x1574   :  { %1033 = vrot.lane.b32.xlu0 %v1031_v60, %s3281_s24 }
0x15e6   :  { %v1034_v62 = vpop.permute.xlu0 %1033 }
0x15e7   :  { %v1036_v14 = vadd.f32 %v1034_v62, %v1026_v61 }
0x15e9   :  { %v1152_v63 = vmul.f32 %v3077_v47, %v1036_v14 }
0x15eb   :  { %v1162_v51 = vadd.f32 %v1160_v0, %v1152_v63 }
0x15ed   :  { %3084 = vtanh.f32 %v1162_v51 }
0x15f7   :  { %v3085_v40 = vpop.eup %3084 }
0x15f8   :  { %1165 = vrot.lane.b32.xlu0 %v3085_v40, %s3283_s20  ;;  %v1402_v40 = vrot.slane %v1400_v2, 6 }
0x166a   :  { %v1166_v8 = vpop.permute.xlu0 %1165 }
0x166b   :  { %v3671_v9 = vmul.f32 %v3077_v47, %v1166_v8 }
0x166d   :  { %1181 = vrot.lane.b32.xlu0 %v3671_v9, %s3280_s3  ;;  %1178 = vrot.lane.b32.xlu1 %v3671_v9, %s3286_s4 }
0x1671   :  { %1173 = vrot.lane.b32.xlu1 %v1172_v11, %s3279_s11 }
0x16df   :  { %v1182_v13 = vpop.permute.xlu0 %1181  ;;  %v3681_v15 = vpop.permute.xlu1 %1178 }
0x16e0   :  { %v1184_v16 = vsel %vm260_vm8, %v3681_v15, %v1182_v13 }
0x16e1   :  { %v1185_v18 = vmul.f32 %v3504_v45, %v1184_v16  ;;  %v1399_v16 = vld [vmem:[#allocation3 + $0x6] sm:$0x3] }
0x16e3   :  { %2764 = vmatmul.mubr.msk.f32.vlgmr.msra.gmra.mrb[8].mxu1 %vm124_vm0, %v1185_v18  ;;  %v1174_v19 = vpop.permute.xlu1 %1173 }
0x16e4   :  { %2940 = vmatpush3.bf16.msra.mxu1 %v3652_v3  ;;  %2785 = vmatprep.mubr.msk.f32.mxu1 %vm3284_vm2, %v3285_v37  ;;  %v1176_v21 = vsel %vm219_vm1, %v3693_v20, %v1174_v19 }
0x16e5   :  { %2941 = vmatprep.subr.bf16.mxu1 %v3282_v31 }
0x16e8   :  { %2943 = vmatpush3.bf16.msra.mxu1 %v3665_v7 }
0x16e9   :  { %2950 = vmatprep.subr.bf16.mxu1 %v3282_v31 }
0x17b6   :  { %v1255_v22 = vpop.f32.mrb[8].mxu1 }
0x17b7   :  { %v1259_v23 = vadd.f32 %v1255_v22, %v1176_v21  ;;  %v2765_v24 = vpop.f32.mrb[9].mxu1 }
0x17b9   :  { %3086 = vtanh.f32 %v1259_v23  ;;  %v2534_v26 = vmul.f32 -1.442695, %v1259_v23 }
0x17bb   :  { %3088 = vpow2.f32 %v2534_v26 }
0x17c3   :  { %v3087_v25 = vpop.eup %3086 }
0x17c4   :  { %1269 = vrot.lane.b32.xlu0 %v3087_v25, %s3280_s3 }
0x17c5   :  { %v3089_v27 = vpop.eup %3088 }
0x17c6   :  { %v1263_v29 = vadd.f32 1.0, %v3089_v27 }
0x17c8   :  { %3090 = vrcp.f32 %v1263_v29 }
0x17d2   :  { %v3091_v30 = vpop.eup %3090 }
0x17d3   :  { %v1267_v12 = vmul.f32 %v3091_v30, %v1162_v51 }
0x1836   :  { %v1270_v33 = vpop.permute.xlu0 %1269 }
0x1837   :  { %v1272_v34 = vmul.f32 %v3091_v30, %v1270_v33 }
0x1839   :  { %1274 = vrot.lane.b32.xlu1 %v1272_v34, %s3281_s24 }
0x18ab   :  { %v1275_v35 = vpop.permute.xlu1 %1274 }
0x18ac   :  { %v1277_v38 = vadd.f32 %v1275_v35, %v1267_v12 }
0x18ae   :  { %3092 = vtanh.f32 %v1277_v38 }
0x18b8   :  { %v3093_v41 = vpop.eup %3092 }
0x18b9   :  { %1280 = vrot.lane.b32.xlu0 %v3093_v41, %s3283_s20 }
0x192b   :  { %v1281_v42 = vpop.permute.xlu0 %1280 }
0x192c   :  { %v3700_v17 = vmul.f32 %v3091_v30, %v1281_v42  ;;  %v1515_v42 = vrot.slane %v1399_v16, 6 }
0x192e   :  { %1296 = vrot.lane.b32.xlu0 %v3700_v17, %s3280_s3  ;;  %1293 = vrot.lane.b32.xlu1 %v3700_v17, %s3286_s4 }
0x1932   :  { %1288 = vrot.lane.b32.xlu1 %v1287_v43, %s3279_s11 }
0x19a0   :  { %v1297_v46 = vpop.permute.xlu0 %1296  ;;  %v3710_v47 = vpop.permute.xlu1 %1293 }
0x19a1   :  { %v1299_v36 = vsel %vm260_vm8, %v3710_v47, %v1297_v46 }
0x19a2   :  { %v1300_v48 = vmul.f32 %v3504_v45, %v1299_v36 }
0x19a4   :  { %2775 = vmatmul.mubr.msk.f32.vlgmr.msra.gmra.mrb[10].mxu0 %vm124_vm0, %v1300_v48  ;;  %v1289_v49 = vpop.permute.xlu1 %1288 }
0x19a5   :  { %2946 = vmatpush3.bf16.msra.mxu0 %v3652_v3  ;;  %2796 = vmatprep.mubr.msk.f32.mxu0 %vm3284_vm2, %v3285_v37  ;;  %v1291_v5 = vsel %vm219_vm1, %v3722_v50, %v1289_v49 }
0x19a6   :  { %2947 = vmatprep.subr.bf16.mxu0 %v3282_v31 }
0x19a9   :  { %2949 = vmatpush3.bf16.msra.mxu0 %v3665_v7 }
0x19aa   :  { %2956 = vmatprep.subr.bf16.mxu0 %v3282_v31 }
0x1a77   :  { %v1370_v52 = vpop.f32.mrb[10].mxu0 }
0x1a78   :  { %v1374_v53 = vadd.f32 %v1370_v52, %v1291_v5  ;;  %v2776_v54 = vpop.f32.mrb[11].mxu0 }
0x1a7a   :  { %3094 = vtanh.f32 %v1374_v53  ;;  %v2536_v56 = vmul.f32 -1.442695, %v1374_v53 }
0x1a7c   :  { %3096 = vpow2.f32 %v2536_v56 }
0x1a84   :  { %v3095_v55 = vpop.eup %3094 }
0x1a85   :  { %1384 = vrot.lane.b32.xlu0 %v3095_v55, %s3280_s3 }
0x1a86   :  { %v3097_v57 = vpop.eup %3096 }
0x1a87   :  { %v1378_v58 = vadd.f32 1.0, %v3097_v57 }
0x1a89   :  { %3098 = vrcp.f32 %v1378_v58 }
0x1a93   :  { %v3099_v59 = vpop.eup %3098 }
0x1a94   :  { %v1382_v62 = vmul.f32 %v3099_v59, %v1277_v38 }
0x1af7   :  { %v1385_v60 = vpop.permute.xlu0 %1384 }
0x1af8   :  { %v1387_v61 = vmul.f32 %v3099_v59, %v1385_v60 }
0x1afa   :  { %1389 = vrot.lane.b32.xlu1 %v1387_v61, %s3281_s24 }
0x1b6c   :  { %v1390_v14 = vpop.permute.xlu1 %1389 }
0x1b6d   :  { %v1392_v63 = vadd.f32 %v1390_v14, %v1382_v62 }
0x1b6f   :  { %3100 = vtanh.f32 %v1392_v63 }
0x1b79   :  { %v3101_v0 = vpop.eup %3100 }
0x1b7a   :  { %1395 = vrot.lane.b32.xlu0 %v3101_v0, %s3283_s20 }
0x1bec   :  { %v1396_v51 = vpop.permute.xlu0 %1395 }
0x1bed   :  { %v3729_v1 = vmul.f32 %v3099_v59, %v1396_v51 }
0x1bef   :  { %1411 = vrot.lane.b32.xlu0 %v3729_v1, %s3280_s3  ;;  %1408 = vrot.lane.b32.xlu1 %v3729_v1, %s3286_s4 }
0x1bf3   :  { %1403 = vrot.lane.b32.xlu1 %v1402_v40, %s3279_s11  ;;  %v1628_v40 = vrot.slane %v3722_v50, 6 }
0x1c61   :  { %v1412_v4 = vpop.permute.xlu0 %1411  ;;  %v3736_v6 = vpop.permute.xlu1 %1408 }
0x1c62   :  { %v1414_v8 = vsel %vm260_vm8, %v3736_v6, %v1412_v4 }
0x1c63   :  { %v1415_v11 = vmul.f32 %v3504_v45, %v1414_v8 }
0x1c65   :  { %2786 = vmatmul.mubr.msk.f32.vlgmr.msra.gmra.mrb[10].mxu1 %vm124_vm0, %v1415_v11  ;;  %v1404_v13 = vpop.permute.xlu1 %1403 }
0x1c66   :  { %2952 = vmatpush3.bf16.msra.mxu1 %v3652_v3  ;;  %2807 = vmatprep.mubr.msk.f32.mxu1 %vm3284_vm2, %v3285_v37  ;;  %v1406_v18 = vsel %vm219_vm1, %v1399_v16, %v1404_v13 }
0x1c67   :  { %2953 = vmatprep.subr.bf16.mxu1 %v3282_v31 }
0x1c6a   :  { %2955 = vmatpush3.bf16.msra.mxu1 %v3665_v7 }
0x1c6b   :  { %2962 = vmatprep.subr.bf16.mxu1 %v3282_v31 }
0x1d38   :  { %v1485_v19 = vpop.f32.mrb[10].mxu1 }
0x1d39   :  { %v1489_v21 = vadd.f32 %v1485_v19, %v1406_v18  ;;  %v2787_v22 = vpop.f32.mrb[11].mxu1 }
0x1d3b   :  { %3102 = vtanh.f32 %v1489_v21  ;;  %v2538_v24 = vmul.f32 -1.442695, %v1489_v21 }
0x1d3d   :  { %3104 = vpow2.f32 %v2538_v24 }
0x1d45   :  { %v3103_v23 = vpop.eup %3102 }
0x1d46   :  { %1499 = vrot.lane.b32.xlu0 %v3103_v23, %s3280_s3 }
0x1d47   :  { %v3105_v25 = vpop.eup %3104 }
0x1d48   :  { %v1493_v26 = vadd.f32 1.0, %v3105_v25 }
0x1d4a   :  { %3106 = vrcp.f32 %v1493_v26 }
0x1d54   :  { %v3107_v27 = vpop.eup %3106 }
0x1d55   :  { %v1497_v33 = vmul.f32 %v3107_v27, %v1392_v63 }
0x1db8   :  { %v1500_v29 = vpop.permute.xlu0 %1499 }
0x1db9   :  { %v1502_v30 = vmul.f32 %v3107_v27, %v1500_v29 }
0x1dbb   :  { %1504 = vrot.lane.b32.xlu1 %v1502_v30, %s3281_s24 }
0x1e2d   :  { %v1505_v34 = vpop.permute.xlu1 %1504 }
0x1e2e   :  { %v1507_v12 = vadd.f32 %v1505_v34, %v1497_v33 }
0x1e30   :  { %3108 = vtanh.f32 %v1507_v12 }
0x1e3a   :  { %v3109_v35 = vpop.eup %3108 }
0x1e3b   :  { %1510 = vrot.lane.b32.xlu0 %v3109_v35, %s3283_s20 }
0x1ead   :  { %v1511_v38 = vpop.permute.xlu0 %1510 }
0x1eae   :  { %v3752_v41 = vmul.f32 %v3107_v27, %v1511_v38 }
0x1eb0   :  { %1524 = vrot.lane.b32.xlu0 %v3752_v41, %s3280_s3  ;;  %1521 = vrot.lane.b32.xlu1 %v3752_v41, %s3286_s4 }
0x1eb4   :  { %1516 = vrot.lane.b32.xlu1 %v1515_v42, %s3279_s11 }
0x1f22   :  { %v1525_v43 = vpop.permute.xlu0 %1524  ;;  %v3759_v46 = vpop.permute.xlu1 %1521 }
0x1f23   :  { %v1527_v36 = vsel %vm260_vm8, %v3759_v46, %v1525_v43 }
0x1f24   :  { %v1528_v48 = vmul.f32 %v3504_v45, %v1527_v36 }
0x1f26   :  { %2797 = vmatmul.mubr.msk.f32.vlgmr.msra.gmra.mrb[12].mxu0 %vm124_vm0, %v1528_v48  ;;  %v1517_v49 = vpop.permute.xlu1 %1516 }
0x1f27   :  { %2958 = vmatpush3.bf16.msra.mxu0 %v3652_v3  ;;  %2818 = vmatprep.mubr.msk.f32.mxu0 %vm3284_vm2, %v3285_v37  ;;  %v1519_v5 = vsel %vm219_vm1, %v1400_v2, %v1517_v49 }
0x1f28   :  { %2959 = vmatprep.subr.bf16.mxu0 %v3282_v31 }
0x1f2b   :  { %2961 = vmatpush3.bf16.msra.mxu0 %v3665_v7 }
0x1ff9   :  { %v1598_v52 = vpop.f32.mrb[12].mxu0 }
0x1ffa   :  { %v1602_v53 = vadd.f32 %v1598_v52, %v1519_v5  ;;  %v2798_v54 = vpop.f32.mrb[13].mxu0 }
0x1ffc   :  { %3110 = vtanh.f32 %v1602_v53  ;;  %v2540_v56 = vmul.f32 -1.442695, %v1602_v53 }
0x1ffe   :  { %3112 = vpow2.f32 %v2540_v56 }
0x2006   :  { %v3111_v55 = vpop.eup %3110 }
0x2007   :  { %1612 = vrot.lane.b32.xlu0 %v3111_v55, %s3280_s3 }
0x2008   :  { %v3113_v57 = vpop.eup %3112 }
0x2009   :  { %v1606_v58 = vadd.f32 1.0, %v3113_v57 }
0x200b   :  { %3114 = vrcp.f32 %v1606_v58 }
0x2015   :  { %v3115_v59 = vpop.eup %3114 }
0x2016   :  { %v1610_v62 = vmul.f32 %v3115_v59, %v1507_v12  ;;  %v1741_v12 = vrot.slane %v3693_v20, 6 }
0x2079   :  { %v1613_v60 = vpop.permute.xlu0 %1612 }
0x207a   :  { %v1615_v61 = vmul.f32 %v3115_v59, %v1613_v60 }
0x207c   :  { %1617 = vrot.lane.b32.xlu1 %v1615_v61, %s3281_s24 }
0x20ee   :  { %v1618_v14 = vpop.permute.xlu1 %1617 }
0x20ef   :  { %v1620_v63 = vadd.f32 %v1618_v14, %v1610_v62 }
0x20f1   :  { %3116 = vtanh.f32 %v1620_v63 }
0x20fb   :  { %v3117_v0 = vpop.eup %3116 }
0x20fc   :  { %1623 = vrot.lane.b32.xlu0 %v3117_v0, %s3283_s20 }
0x216e   :  { %v1624_v51 = vpop.permute.xlu0 %1623 }
0x216f   :  { %v3774_v2 = vmul.f32 %v3115_v59, %v1624_v51 }
0x2171   :  { %1637 = vrot.lane.b32.xlu0 %v3774_v2, %s3280_s3  ;;  %1634 = vrot.lane.b32.xlu1 %v3774_v2, %s3286_s4 }
0x2175   :  { %1629 = vrot.lane.b32.xlu1 %v1628_v40, %s3279_s11 }
0x21e3   :  { %v1638_v4 = vpop.permute.xlu0 %1637  ;;  %v3782_v8 = vpop.permute.xlu1 %1634 }
0x21e4   :  { %v1640_v11 = vsel %vm260_vm8, %v3782_v8, %v1638_v4 }
0x21e5   :  { %v1641_v13 = vmul.f32 %v3504_v45, %v1640_v11 }
0x21e7   :  { %2808 = vmatmul.mubr.msk.f32.vlgmr.msra.gmra.mrb[12].mxu1 %vm124_vm0, %v1641_v13  ;;  %v1630_v50 = vpop.permute.xlu1 %1629 }
0x21e8   :  { %2964 = vmatpush3.bf16.msra.mxu1 %v3652_v3  ;;  %2829 = vmatprep.mubr.msk.f32.mxu1 %vm3284_vm2, %v3285_v37  ;;  %v1632_v16 = vsel %vm219_vm1, %v3702_v32, %v1630_v50 }
0x21e9   :  { %2965 = vmatprep.subr.bf16.mxu1 %v3282_v31 }
0x21ec   :  { %2967 = vmatpush3.bf16.msra.mxu1 %v3665_v7 }
0x22ba   :  { %v1711_v18 = vpop.f32.mrb[12].mxu1 }
0x22bb   :  { %v1715_v19 = vadd.f32 %v1711_v18, %v1632_v16  ;;  %v2809_v21 = vpop.f32.mrb[13].mxu1 }
0x22bd   :  { %3118 = vtanh.f32 %v1715_v19  ;;  %v2542_v23 = vmul.f32 -1.442695, %v1715_v19 }
0x22bf   :  { %3120 = vpow2.f32 %v2542_v23 }
0x22c7   :  { %v3119_v22 = vpop.eup %3118 }
0x22c8   :  { %1725 = vrot.lane.b32.xlu0 %v3119_v22, %s3280_s3 }
0x22c9   :  { %v3121_v3 = vpop.eup %3120 }
0x22ca   :  { %v1719_v24 = vadd.f32 1.0, %v3121_v3 }
0x22cc   :  { %3122 = vrcp.f32 %v1719_v24 }
0x22d6   :  { %v3123_v25 = vpop.eup %3122 }
0x22d7   :  { %v1723_v7 = vmul.f32 %v3123_v25, %v1620_v63  ;;  %v1854_v63 = vrot.slane %v3633_v39, 6 }
0x233a   :  { %v1726_v26 = vpop.permute.xlu0 %1725 }
0x233b   :  { %v1728_v27 = vmul.f32 %v3123_v25, %v1726_v26  ;;  %v1987_v26 = vrot.slane %v3752_v41, 2  ;;  %v2037_v41 = vld [vmem:[%s3979_s8 + $0x8] sm:$0xff] }
0x233d   :  { %1730 = vrot.lane.b32.xlu1 %v1728_v27, %s3281_s24  ;;  %v2005_v27 = vrot.slane %v3671_v9, 2  ;;  %v2036_v9 = vld [vmem:[%s3979_s8] sm:$0xff] }
0x23af   :  { %v1731_v29 = vpop.permute.xlu1 %1730 }
0x23b0   :  { %v1733_v32 = vadd.f32 %v1731_v29, %v1723_v7 }
0x23b2   :  { %3124 = vtanh.f32 %v1733_v32 }
0x23bc   :  { %v3125_v30 = vpop.eup %3124 }
0x23bd   :  { %1736 = vrot.lane.b32.xlu0 %v3125_v30, %s3283_s20 }
0x242f   :  { %v1737_v33 = vpop.permute.xlu0 %1736 }
0x2430   :  { %v3798_v34 = vmul.f32 %v3123_v25, %v1737_v33  ;;  %v1982_v25 = vrot.slane %v3774_v2, 2  ;;  %v1997_v2 = vrot.slane %v3700_v17, 2  ;;  %v2968_v33 = vpack.c.bf16 %v2037_v41, %v2036_v9  ;;  %v2039_v17 = vld [vmem:[%s3979_s8 + $0x18] sm:$0xff] }
0x2432   :  { %1750 = vrot.lane.b32.xlu0 %v3798_v34, %s3280_s3  ;;  %1747 = vrot.lane.b32.xlu1 %v3798_v34, %s3286_s4 }
0x2433   :  { %2969 = vmatprep.subr.bf16.mxu0 %v2968_v33 }
0x2436   :  { %1742 = vrot.lane.b32.xlu1 %v1741_v12, %s3279_s11 }
0x24a4   :  { %v1751_v35 = vpop.permute.xlu0 %1750  ;;  %v3806_v38 = vpop.permute.xlu1 %1747 }
0x24a5   :  { %v1753_v42 = vsel %vm260_vm8, %v3806_v38, %v1751_v35 }
0x24a6   :  { %v1754_v43 = vmul.f32 %v3504_v45, %v1753_v42 }
0x24a8   :  { %2819 = vmatmul.mubr.msk.f32.vlgmr.msra.gmra.mrb[14].mxu0 %vm124_vm0, %v1754_v43  ;;  %v1743_v36 = vpop.permute.xlu1 %1742 }
0x24a9   :  { %v1745_v48 = vsel %vm219_vm1, %v3673_v10, %v1743_v36  ;;  %2971 = vmatpush3.bf16.msra.mxu0 %v2968_v33 }
0x257b   :  { %v1824_v49 = vpop.f32.mrb[14].mxu0 }
0x257c   :  { %v1828_v5 = vadd.f32 %v1824_v49, %v1745_v48  ;;  %v2820_v52 = vpop.f32.mrb[15].mxu0 }
0x257e   :  { %3126 = vtanh.f32 %v1828_v5  ;;  %v2544_v53 = vmul.f32 -1.442695, %v1828_v5 }
0x2580   :  { %3128 = vpow2.f32 %v2544_v53 }
0x2588   :  { %v3127_v20 = vpop.eup %3126 }
0x2589   :  { %1838 = vrot.lane.b32.xlu0 %v3127_v20, %s3280_s3 }
0x258a   :  { %v3129_v54 = vpop.eup %3128 }
0x258b   :  { %v1832_v55 = vadd.f32 1.0, %v3129_v54 }
0x258d   :  { %3130 = vrcp.f32 %v1832_v55 }
0x2597   :  { %v3131_v56 = vpop.eup %3130 }
0x2598   :  { %v1836_v59 = vmul.f32 %v3131_v56, %v1733_v32 }
0x25fb   :  { %v1839_v57 = vpop.permute.xlu0 %1838 }
0x25fc   :  { %v1841_v58 = vmul.f32 %v3131_v56, %v1839_v57 }
0x25fe   :  { %1843 = vrot.lane.b32.xlu1 %v1841_v58, %s3281_s24 }
0x2670   :  { %v1844_v60 = vpop.permute.xlu1 %1843 }
0x2671   :  { %v1846_v10 = vadd.f32 %v1844_v60, %v1836_v59 }
0x2673   :  { %3132 = vtanh.f32 %v1846_v10 }
0x267d   :  { %v3133_v61 = vpop.eup %3132 }
0x267e   :  { %1849 = vrot.lane.b32.xlu0 %v3133_v61, %s3283_s20 }
0x26f0   :  { %v1850_v62 = vpop.permute.xlu0 %1849 }
0x26f1   :  { %v1852_v14 = vmul.f32 %v3131_v56, %v1850_v62 }
0x26f3   :  { %1863 = vrot.lane.b32.xlu0 %v1852_v14, %s3280_s3  ;;  %1860 = vrot.lane.b32.xlu1 %v1852_v14, %s3286_s4  ;;  %v1972_v24 = vrot.slane %v1852_v14, 2 }
0x26f7   :  { %1855 = vrot.lane.b32.xlu1 %v1854_v63, %s3279_s11 }
0x2765   :  { %v1864_v0 = vpop.permute.xlu0 %1863  ;;  %v3821_v51 = vpop.permute.xlu1 %1860 }
0x2766   :  { %v1866_v40 = vsel %vm260_vm8, %v3821_v51, %v1864_v0 }
0x2767   :  { %v1867_v4 = vmul.f32 %v3504_v45, %v1866_v40 }
0x2769   :  { %2830 = vmatmul.mubr.msk.f32.vlgmr.msra.gmra.mrb[14].mxu1 %vm124_vm0, %v1867_v4  ;;  %v1856_v11 = vpop.permute.xlu1 %1855 }
0x276a   :  { %v1858_v13 = vsel %vm219_vm1, %v3623_v28, %v1856_v11  ;;  %v1992_v28 = vrot.slane %v3729_v1, 2  ;;  %v1977_v1 = vrot.slane %v3798_v34, 2  ;;  %v2038_v34 = vld [vmem:[%s3979_s8 + $0x10] sm:$0xff] }
0x276b   :  { %v2972_v12 = vpack.c.bf16 %v2039_v17, %v2038_v34 }
0x276d   :  { %2973 = vmatprep.subr.bf16.mxu0 %v2972_v12 }
0x276e   :  { %2975 = vmatpush3.bf16.msra.mxu0 %v2972_v12 }
0x276f   :  { %2983 = vmatprep.subr.bf16.mxu0 %v3282_v31 }
0x283c   :  { %v1937_v50 = vpop.f32.mrb[14].mxu1 }
0x283d   :  { %v1941_v16 = vadd.f32 %v1937_v50, %v1858_v13  ;;  %v2831_v18 = vpop.f32.mrb[15].mxu1  ;;  %v2131_v13 = vld [vmem:[%s3981_s10 + $0x8] sm:$0xff] }
0x283f   :  { %3134 = vtanh.f32 %v1941_v16  ;;  %v2546_v19 = vmul.f32 -1.442695, %v1941_v16  ;;  %v2547_v16 = vld [vmem:[%s3980_s9] ss:$0 sm:$0xff] }
0x2841   :  { %3136 = vpow2.f32 %v2546_v19 }
0x2849   :  { %v3135_v39 = vpop.eup %3134 }
0x284a   :  { %1951 = vrot.lane.b32.xlu0 %v3135_v39, %s3280_s3 }
0x284b   :  { %v3137_v21 = vpop.eup %3136 }
0x284c   :  { %v1945_v22 = vadd.f32 1.0, %v3137_v21 }
0x284e   :  { %3138 = vrcp.f32 %v1945_v22 }
0x2858   :  { %v3139_v23 = vpop.eup %3138 }
0x2859   :  { %v1949_v7 = vmul.f32 %v3139_v23, %v1846_v10 }
0x28bc   :  { %v1952_v45 = vpop.permute.xlu0 %1951 }
0x28bd   :  { %v1954_v3 = vmul.f32 %v3139_v23, %v1952_v45  ;;  %v3288_v45 = vmov 0  }
0x28be   :  { %3008 = vset.pattern.permute.xlu1 %v3288_v45  ;;  %3007 = vset.pattern.permute.xlu0 %v3288_v45 }
0x28bf   :  { %1956 = vrot.lane.b32.xlu1 %v1954_v3, %s3281_s24  ;;  %v2550_v3 = vld [vmem:[#allocation4] ss:$0 sm:$0xff] }
0x28c3   :  { %1973 = vrot.lane.b32.xlu1 %v1972_v24, %s3280_s3 }
0x28c7   :  { %1993 = vrot.lane.b32.xlu1 %v1992_v28, %s3280_s3 }
0x28cb   :  { %1983 = vrot.lane.b32.xlu1 %v1982_v25, %s3280_s3 }
0x28cf   :  { %1988 = vrot.lane.b32.xlu1 %v1987_v26, %s3280_s3 }
0x28d3   :  { %2006 = vrot.lane.b32.xlu1 %v2005_v27, %s3280_s3  ;;  %v2221_v27 = vld [vmem:[%s3986_s15 + $0x8] sm:$0xff] }
0x28d4   :  { %vm2223_vm11 = vcmp.gt.f32.partialorder %v2221_v27, 0.0 }
0x2931   :  { %v1957_v29 = vpop.permute.xlu1 %1956 }
0x2932   :  { %v1959_v32 = vadd.f32 %v1957_v29, %v1949_v7 }
0x2934   :  { %3140 = vtanh.f32 %v1959_v32 }
0x2935   :  { %v1974_v36 = vpop.permute.xlu1 %1973 }
0x2936   :  { %v1976_v20 = vsel %vm260_vm8, %v3710_v47, %v1974_v36 }
0x2937   :  { %v2011_v56 = vrot.slane %v1976_v20, 6 }
0x2939   :  { %v1994_v48 = vpop.permute.xlu1 %1993 }
0x293a   :  { %v1996_v59 = vsel %vm260_vm8, %v3806_v38, %v1994_v48 }
0x293b   :  { %v2020_v14 = vrot.slane %v1996_v59, 6 }
0x293d   :  { %v1984_v5 = vpop.permute.xlu1 %1983 }
0x293e   :  { %v3141_v30 = vpop.eup %3140  ;;  %v1986_v55 = vsel %vm260_vm8, %v3759_v46, %v1984_v5 }
0x293f   :  { %1962 = vrot.lane.b32.xlu0 %v3141_v30, %s3283_s20  ;;  %v2017_v47 = vrot.slane %v1986_v55, 2 }
0x2941   :  { %v1989_v53 = vpop.permute.xlu1 %1988 }
0x2942   :  { %v1991_v46 = vsel %vm260_vm8, %v3782_v8, %v1989_v53  ;;  %v2130_v8 = vld [vmem:[%s3981_s10] sm:$0xff] }
0x2943   :  { %1978 = vrot.lane.b32.xlu0 %v1977_v1, %s3280_s3  ;;  %v2976_v50 = vpack.c.bf16 %v2131_v13, %v2130_v8  ;;  %v2364_v8 = vld [vmem:[%s3983_s12 + $0x18] sm:$0xff] }
0x2945   :  { %v2007_v63 = vpop.permute.xlu1 %2006  ;;  %2977 = vmatprep.subr.bf16.mxu1 %v2976_v50 }
0x2946   :  { %2979 = vmatpush3.bf16.msra.mxu1 %v2976_v50  ;;  %v2459_v50 = vld [vmem:[%s3987_s16] sm:$0x3] }
0x2947   :  { %1998 = vrot.lane.b32.xlu0 %v1997_v2, %s3280_s3  ;;  %2980 = vmatprep.subr.bf16.mxu1 %v3282_v31 }
0x29b1   :  { %v1963_v35 = vpop.permute.xlu0 %1962 }
0x29b2   :  { %v1965_v42 = vmul.f32 %v3139_v23, %v1963_v35 }
0x29b4   :  { %v1967_v43 = vrot.slane %v1965_v42, 2 }
0x29b5   :  { %v1979_v49 = vpop.permute.xlu0 %1978 }
0x29b6   :  { %1968 = vrot.lane.b32.xlu0 %v1967_v43, %s3280_s3  ;;  %v1981_v54 = vsel %vm260_vm8, %v3736_v6, %v1979_v49 }
0x29b7   :  { %v2014_v60 = vrot.slane %v1981_v54, 4 }
0x29b9   :  { %v1999_v52 = vpop.permute.xlu0 %1998 }
0x29ba   :  { %2002 = vrot.lane.b32.xlu0 %v1965_v42, %s3286_s4  ;;  %v2001_v57 = vsel %vm260_vm8, %v3821_v51, %v1999_v52 }
0x29bb   :  { %v2023_v61 = vrot.slane %v2001_v57, 4 }
0x2a28   :  { %v1969_v58 = vpop.permute.xlu0 %1968 }
0x2a29   :  { %v1971_v10 = vsel %vm260_vm8, %v3681_v15, %v1969_v58  ;;  %v2033_v15 = vsel %vm219_vm1, %v1991_v46, %v2020_v14  ;;  %v3289_v58 = vmov 32  }
0x2a2a   :  { %v2028_v6 = vsel %vm219_vm1, %v1971_v10, %v2011_v56  ;;  %v2034_v4 = vsel %vm2029_vm10, %v2033_v15, %v2023_v61 }
0x2a2b   :  { %v2030_v62 = vsel %vm2029_vm10, %v2028_v6, %v2014_v60 }
0x2a2c   :  { %v2003_v0 = vpop.permute.xlu0 %2002  ;;  %v3876_v51 = vsel %vm2031_vm9, %v2030_v62, %v2017_v47 }
0x2a2d   :  { %v2009_v38 = vsel %vm260_vm8, %v2003_v0, %v2007_v63  ;;  %2840 = vmatprep.mubr.msk.f32.mxu0 %vm124_vm0, %v3876_v51  ;;  %v2280_v0 = vld [vmem:[%s3985_s14] sm:$0x3] }
0x2a2e   :  { %v2026_v40 = vrot.slane %v2009_v38, 2 }
0x2a30   :  { %v3883_v11 = vsel %vm2031_vm9, %v2034_v4, %v2026_v40  ;;  %v2362_v40 = vld [vmem:[%s3983_s12 + $0x8] sm:$0xff] }
0x2a31   :  { %2841 = vmatmul.mubr.msk.f32.vlgmr.msra.gmra.mrb[16].mxu0 %vm124_vm0, %v3883_v11 }
0x2a32   :  { %2865 = vmatprep.mubr.msk.f32.mxu0 %vm3284_vm2, %v3285_v37 }
0x2b04   :  { %v2842_v18 = vpop.f32.mrb[16].mxu0 }
0x2b05   :  { %v2125_v39 = vadd.f32 %v2842_v18, %v2547_v16  ;;  %v2119_v19 = vpop.f32.mrb[17].mxu0 }
0x2b06   :  { %v2120_v21 = vadd.f32 %v2547_v16, %v2119_v19 }
0x2b08   :  { %3142 = vtanh.f32 %v2120_v21 }
0x2b09   :  { %3144 = vtanh.f32 %v2125_v39 }
0x2b12   :  { %v3143_v22 = vpop.eup %3142 }
0x2b13   :  { %v3145_v23 = vpop.eup %3144  ;;  %2847 = vmatprep.mubr.msk.f32.mxu1 %vm260_vm8, %v3143_v22 }
0x2b14   :  { %2848 = vmatmul.mubr.msk.f32.vlgmr.msra.gmra.mrb[16].mxu1 %vm260_vm8, %v3145_v23 }
0x2b15   :  { %2854 = vmatprep.mubr.msk.f32.mxu1 %vm3284_vm2, %v3285_v37  ;;  %v2220_v37 = vld [vmem:[%s3986_s15] sm:$0xff] }
0x2b16   :  { %vm2222_vm13 = vcmp.gt.f32.partialorder %v2220_v37, 0.0 }
0x2be7   :  { %v2849_v24 = vpop.f32.mrb[16].mxu1 }
0x2be8   :  { %v2217_v28 = vadd.f32 %v2849_v24, %v2550_v3  ;;  %v2211_v25 = vpop.f32.mrb[17].mxu1 }
0x2be9   :  { %v2212_v26 = vadd.f32 %v2550_v3, %v2211_v25 }
0x2bea   :  { %2231 = vperm.xlu1 %3008, %v2217_v28  }
0x2beb   :  { %2226 = vperm.xlu0 %3007, %v2212_v26  }
0x2c69   :  { %v2232_v7 = vpop.permute.xlu1 %2231 }
0x2c6a   :  { %v2235_v29 = vsel %vm2223_vm11, %v2232_v7, -inf  ;;  %v2227_v32 = vpop.permute.xlu0 %2226 }
0x2c6b   :  { %v2238_v30 = vsel %vm2236_vm12, %v2235_v29, -inf  ;;  %v2234_v1 = vsel %vm2222_vm13, %v2227_v32, -inf }
0x2c6c   :  { %v2237_v2 = vsel %vm2236_vm12, %v2234_v1, -inf }
0x2c6d   :  { %v2239_v9 = vmax.f32 %v2237_v2, %v2238_v30 }
0x2c6f   :  { %v2240_v41 = vrot.slane %v2239_v9, 4 }
0x2c71   :  { %v2241_v33 = vmax.f32 %v2239_v9, %v2240_v41 }
0x2c73   :  { %v2242_v34 = vrot.slane %v2241_v33, 2 }
0x2c75   :  { %v2243_v17 = vmax.f32 %v2241_v33, %v2242_v34 }
0x2c77   :  { %v2244_v12 = vrot.slane %v2243_v17, 1 }
0x2c79   :  { %v2245_v35 = vmax.f32 %v2243_v17, %v2244_v12 }
0x2c7b   :  { %v2246_v42 = vmul.f32 %v2245_v35, %v2220_v37  ;;  %v2247_v43 = vmul.f32 %v2245_v35, %v2221_v27 }
0x2c7d   :  { %v2251_v36 = vsel %vm2236_vm12, %v2247_v43, 0.0  ;;  %v2248_v48 = vsel %vm2236_vm12, %v2246_v42, 0.0 }
0x2c7e   :  { %2252 = vadd.xlane.f32.xlu0 %v2251_v36  ;;  %2249 = vadd.xlane.f32.xlu1 %v2248_v48 }
0x2d0b   :  { %v2253_v49 = vpop.xlane.xlu0 %2252  ;;  %v2250_v5 = vpop.xlane.xlu1 %2249 }
0x2d0c   :  { %v2255_v52 = vsub.f32 %v2217_v28, %v2253_v49  ;;  %v2254_v20 = vsub.f32 %v2212_v26, %v2250_v5 }
0x2d0e   :  { %v2258_v53 = vmul.f32 1.442695, %v2255_v52  ;;  %v2256_v54 = vmul.f32 1.442695, %v2254_v20 }
0x2d10   :  { %3146 = vpow2.f32 %v2258_v53 }
0x2d11   :  { %3148 = vpow2.f32 %v2256_v54 }
0x2d1a   :  { %v3147_v55 = vpop.eup %3146 }
0x2d1b   :  { %v3149_v56 = vpop.eup %3148  ;;  %2267 = vperm.xlu1 %3008, %v3147_v55  }
0x2d1c   :  { %2262 = vperm.xlu0 %3007, %v3149_v56   ;;  %v3009_v57 = vpack.i.bf16 %v3147_v55, %v3149_v56 }
0x2d1f   :  { %3010 = vrot.lane.b32.xlu1 %v3009_v57, %s3283_s20 }
0x2d20   :  { %3014 = vset.pattern.permute.xlu0 %v3289_v58 }
0x2d9a   :  { %v2268_v59 = vpop.permute.xlu1 %2267 }
0x2d9b   :  { %v2263_v60 = vpop.permute.xlu0 %2262  ;;  %v2271_v6 = vmul.f32 %v2268_v59, %v3883_v11  ;;  %v2363_v11 = vld [vmem:[%s3983_s12 + $0x10] sm:$0xff] }
0x2d9c   :  { %v2270_v47 = vmul.f32 %v2263_v60, %v3876_v51  ;;  %v2361_v51 = vld [vmem:[%s3983_s12] sm:$0xff]  ;;  %v2987_v13 = vpack.c.bf16 %v2364_v8, %v2363_v11  ;;  %s3290_s12 = smov [#allocation11]  }
0x2d9d   :  { %v2984_v4 = vpack.c.bf16 %v2362_v40, %v2361_v51 }
0x2d9e   :  { %v3011_v10 = vpop.permute.xlu1 %3010 }
0x2d9f   :  { %v3013_v46 = vunpack.i.h.bf16 %v3011_v10  ;;  %v3012_v61 = vunpack.i.l.bf16 %v3011_v10  ;;  %2985 = vmatpush3.bf16.msra.mxu0 %v2984_v4 }
0x2da0   :  { %2986 = vmatprep.subr.bf16.mxu0 %v3282_v31  ;;  %v2554_v31 = vld [vmem:[%s3984_s13] ss:$0 sm:$0xff]  ;;  %s2486_s13 = sshll.u32 %s3290_s12, 4  ;;  %s2487_s13 = int_to_ptr.vmem [resolvable:$true] %s2486_s13 }
0x2da1   :  { %v2279_v62 = vsel %vm124_vm0, %v2271_v6, %v3013_v46  ;;  %v2278_v14 = vsel %vm124_vm0, %v2270_v47, %v3012_v61  ;;  %s3222_s16 = scalar_lea.vmem %s2487_s13, 32  ;;  %p3227_p11 = scmp.lt.s32.totalorder %s2487_s13, %s2487_s13 }
0x2da2   :  { %v2981_v63 = vpack.c.bf16 %v2279_v62, %v2278_v14  ;;  %p3223_p10 = scmp.ne.s32.totalorder %s2487_s13, %s3222_s16  ;;  %p3228_p12 = scmp.lt.s32.totalorder %s3222_s16, %s3222_s16 }
0x2da3   :  { %2988 = vmatpush3.bf16.msra.mxu0 %v2987_v13 }
0x2da4   :  { %2982 = vmatpush3.bf16.msra.mxu1 %v2981_v63  ;;  %p3229_p13 = por %p3228_p12, %p3227_p11 }
0x2da6   :  { %p3230_p0 = pnand %p3229_p13, %p3223_p10 }
0x2da7   :  { %2855 = vmatmul.mubr.msk.f32.vlgmr.msra.gmra.mrb[18].mxu1 %vm260_vm8, %v2280_v0 }
0x2e7a   :  { %v2350_v38 = vpop.f32.mrb[18].mxu1 }
0x2e7b   :  { %2356 = vperm.xlu0 %3014, %v2350_v38   ;;  %v2856_v15 = vpop.f32.mrb[19].mxu1 }
0x2e7f   :  { %3015 = vset.pattern.permute.xlu0 %v3288_v45 }
0x2e80   :  { %2461 = vperm.xlu0 %3015, %v2459_v50  }
0x2efa   :  { %v2357_v16 = vpop.permute.xlu0 %2356 }
0x2efb   :  { %3150 = vrcp.f32 %v2357_v16 }
0x2eff   :  { %v2462_v19 = vpop.permute.xlu0 %2461 }
0x2f00   :  { %vm2463_vm15 = vcmp.eq.s32.totalorder %v3500_v44, %v2462_v19 }
0x2f05   :  { %v3151_v18 = vpop.eup %3150 }
0x2f06   :  { %v2360_v39 = vmul.f32 %v3151_v18, %v2350_v38 }
0x2f08   :  { %2866 = vmatmul.mubr.msk.f32.vlgmr.msra.gmra.mrb[18].mxu0 %vm124_vm0, %v2360_v39 }
0x2fdb   :  { %v2441_v21 = vpop.f32.mrb[18].mxu0 }
0x2fdc   :  { %v2442_v22 = vadd.f32 %v2554_v31, %v2441_v21  ;;  %v2867_v23 = vpop.f32.mrb[19].mxu0 }
0x2fde   :  { %v2447_v45 = vsel %vm2445_vm14, %v2442_v22, -inf  ;;  %2446 = vst.msk [vmem:[#allocation11] sm:$0x3] %vm2445_vm14, %v2442_v22  ;;  %v2464_v3 = vsel %vm2463_vm15, %v2442_v22, 0.0 }
0x2fdf   :  { %2448 = vmax.xlane.f32.xlu1 %v2447_v45  ;;  %v2465_v24 = vsel %vm2445_vm14, %v2464_v3, 0.0 }
0x2fe3   :  { %2466 = vadd.xlane.f32.xlu1 %v2465_v24 }
0x306c   :  { %v2449_v28 = vpop.xlane.xlu1 %2448 }
0x306d   :  { %v2450_v25 = vsub.f32 %v2442_v22, %v2449_v28 }
0x306f   :  { %v2451_v26 = vmul.f32 1.442695, %v2450_v25 }
0x3071   :  { %3152 = vpow2.f32 %v2451_v26 }
0x307b   :  { %v3153_v27 = vpop.eup %3152 }
0x307c   :  { %v2453_v37 = vsel %vm2445_vm14, %v3153_v27, 0.0 }
0x307d   :  { %2454 = vadd.xlane.f32.xlu0 %v2453_v37 }
0x307e   :  { %3233 = shalt.err (!%p3230_p0)
}
0x307f   :  { %s3234_s8 = scalar_lea.hbm %s3988_s17, 32 }
0x3080   :  { %p3235_p1 = scmp.ne.s32.totalorder %s3988_s17, %s3234_s8  ;;  %p3238_p2 = scmp.lt.u32.totalorder %s3234_s8, %s3988_s17 }
0x3082   :  { %p3240_p3 = pnand %p3238_p2, %p3235_p1 }
0x3084   :  { %3243 = shalt.err (!%p3240_p3)
}
0x3085   :  { %2489 = dma.vmem_to_hbm [thread:$0]  %s2487_s13, 32, %s3988_s17, [#allocation7]   ;;  %v2467_v30 = vpop.xlane.xlu1 %2466  ;;  %vm2478_vm0 = vcmask 0  }
0x3086   :  { %s3291_s10 = smov [#allocation12]  }
0x3087   :  { %s2496_s26 = sshll.u32 %s3291_s10, 4  ;;  %s2497_s26 = int_to_ptr.vmem [resolvable:$true] %s2496_s26 }
0x3088   :  { %s3244_s17 = scalar_lea.vmem %s2497_s26, 16  ;;  %s3248_s27 = scalar_lea.vmem %s2497_s26, 32 }
0x3089   :  { %p3245_p4 = scmp.ne.s32.totalorder %s2497_s26, %s3244_s17  ;;  %p3249_p5 = scmp.lt.s32.totalorder %s2497_s26, %s2497_s26 }
0x308a   :  { %p3250_p6 = scmp.lt.s32.totalorder %s3248_s27, %s3244_s17 }
0x308c   :  { %p3251_p7 = por %p3250_p6, %p3249_p5 }
0x308e   :  { %p3252_p8 = pnand %p3251_p7, %p3245_p4 }
0x310a   :  { %v2455_v44 = vpop.xlane.xlu0 %2454 }
0x310b   :  { %3154 = vlog2.f32 %v2455_v44 }
0x3115   :  { %v3155_v7 = vpop.eup %3154 }
0x3116   :  { %v2457_v29 = vmul.f32 0.6931472, %v3155_v7 }
0x3118   :  { %v2458_v32 = vadd.f32 %v2457_v29, %v2449_v28 }
0x311a   :  { %v2468_v1 = vsub.f32 %v2458_v32, %v2467_v30 }
0x311c   :  { %v2469_v2 = vsel %vm219_vm1, %v2468_v1, 0.0 }
0x311d   :  { %v2470_v9 = vrot.slane %v2469_v2, 4 }
0x311f   :  { %v2471_v41 = vadd.f32 %v2470_v9, %v2469_v2 }
0x3121   :  { %v2472_v33 = vrot.slane %v2471_v41, 2 }
0x3123   :  { %v2473_v34 = vadd.f32 %v2472_v33, %v2471_v41 }
0x3125   :  { %v2474_v17 = vrot.slane %v2473_v34, 1 }
0x3127   :  { %v2475_v12 = vadd.f32 %v2474_v17, %v2473_v34 }
0x3129   :  { %v2477_v35 = vmul.f32 0.5, %v2475_v12 }
0x312b   :  { %2479 = vst.msk [vmem:[#allocation12] sm:$0x1] %vm2478_vm0, %v2477_v35 }
0x312c   :  { %3255 = shalt.err (!%p3252_p8)
}
0x312d   :  { %s3256_s20 = scalar_lea.hbm %s3989_s18, 16 }
0x312e   :  { %p3257_p9 = scmp.ne.s32.totalorder %s3989_s18, %s3256_s20  ;;  %p3260_p10 = scmp.lt.u32.totalorder %s3256_s20, %s3989_s18 }
0x3130   :  { %p3262_p11 = pnand %p3260_p10, %p3257_p9 }
0x3132   :  { %3265 = shalt.err (!%p3262_p11)
}
0x3133   :  { %2499 = dma.vmem_to_hbm [thread:$0]  %s2497_s26, 16, %s3989_s18, [#allocation13]  }
0x3134   :  { %3270 = dma.done.wait [#allocation7], 32  }
0x3135   :  { %3271 = vsyncadd [#allocation7], 4294967264 }
0x3136   :  { %3272 = dma.done.wait [#allocation13], 16  }
0x3137   :  { %3273 = vsyncadd [#allocation13], 4294967280 }
0x3138   :  { %2506 = vsyncpa [#allocation6], 1 }
0x3139   :  { %2507 = vsyncpa [#allocation9], 1 }
0x313a   :  { %2508 = vsyncpa [#allocation7], 1 }
0x313b   :  { %2509 = vsyncpa [#allocation13], 1 }

</bundles_post_ra>
